<compile_context>
chip_gen: v6e
topology: v6e:2x2x1
jax: 0.10.0
libtpu: 0.0.40
codegen_flags: <defaults>
</compile_context>

<pallas_src>
from functools import partial

import jax
import jax.numpy as jnp
import numpy as np
from jax import lax
from jax.experimental import pallas as pl
from jax.experimental.pallas import tpu as pltpu

KSIZE = 7
PAD = (KSIZE - 1) // 2  # 3


def _spatial_atten_kernel(params_ref, x_ref, masks_ref, out_ref, *, W, c_chunk):
    """params_ref: SMEM (2*7*7 + 1,)   BN-folded conv weights + bias (scalar prefetch)
       x_ref:      VMEM (nb, C, H*W)   nb batch elements, spatially flattened (lane-dense)
       masks_ref:  VMEM (14, H*W)      host-precomputed boundary masks (7 col + 7 row), f32
       out_ref:    VMEM (nb, C, H*W)
    """
    nb, C, HW = x_ref.shape
    inv_c = 1.0 / float(C)

    # --- ChannelPool: [max over C, mean over C] -> two (nb, H*W) f32 maps ---------------------
    # x_ref is read here and the value dies before the conv; no full-block f32 copy is kept
    # live across the conv/sigmoid barrier (which would force a VMEM spill pass).
    if c_chunk >= C:
        xf = x_ref[...].astype(jnp.float32)
        cmax = jnp.max(xf, axis=1)
        csum = jnp.sum(xf, axis=1)
    else:
        def body(i, carry):
            m, s = carry
            c0 = pl.multiple_of(i * c_chunk, c_chunk)
            blk = x_ref[:, pl.ds(c0, c_chunk), :].astype(jnp.float32)
            return jnp.maximum(m, blk.max(axis=1)), s + blk.sum(axis=1)
        cmax, csum = lax.fori_loop(
            0, C // c_chunk, body,
            (jnp.full((nb, HW), -jnp.inf, jnp.float32),
             jnp.zeros((nb, HW), jnp.float32)))
    cmean = csum * inv_c

    # --- host-precomputed edge-validity masks for "same" padding ------------------------------
    col_m = [masks_ref[pl.ds(kj, 1), :] for kj in range(KSIZE)]            # (1, HW) each
    row_m = [masks_ref[pl.ds(KSIZE + ki, 1), :] for ki in range(KSIZE)]    # (1, HW) each

    def lane_shift(a, s):
        # a[..., p] <- a[..., p + s]   (circular; wrap-around is zeroed by the caller's mask)
        if s % HW == 0:
            return a
        return pltpu.roll(a, (-s) % HW, 1)

    # --- 7x7 conv, 2 -> 1 channels, BN folded, accumulated in registers -----------------------
    bias = params_ref[2 * KSIZE * KSIZE]
    acc = jnp.zeros((nb, HW), jnp.float32) + bias

    for c, pooled in enumerate((cmax, cmean)):
        # Column taps first (shared across all ki): 7 XLU rolls + 7 mask multiplies per map.
        cols = [lane_shift(pooled, kj - PAD) * col_m[kj] for kj in range(KSIZE)]
        for ki in range(KSIZE):
            base = c * KSIZE * KSIZE + ki * KSIZE
            inner = cols[0] * params_ref[base + 0]
            for kj in range(1, KSIZE):
                inner = inner + cols[kj] * params_ref[base + kj]
            # Row tap: shifting by (ki-3) rows == (ki-3)*W lanes in the flattened layout.
            acc = acc + lane_shift(inner, (ki - PAD) * W) * row_m[ki]

    # Exact sigmoid kept on purpose: pl.reciprocal(approx=True) would move the divide onto the
    # EUP but costs ~1e-4 relative error, and this kernel is HBM-bound, not VALU-bound.
    scale = jax.nn.sigmoid(acc)                                # (nb, HW) f32

    # --- gate: re-read x_ref (cheap loads) and multiply in the input's native dtype -----------
    # TODO(synk): on v5e (no bf16 VALU) a bf16 input would prefer an f32 gate path; not special-cased.
    xg = x_ref[...]
    out_ref[...] = (xg * scale.astype(xg.dtype)[:, None, :]).astype(out_ref.dtype)


def _vmem_capacity_bytes():
    try:
        return int(pltpu.get_tpu_info().vmem_capacity_bytes)
    except Exception:
        return 64 << 20          # conservative default (v7x-sized VMEM)


def spatial_atten(x, conv_w, bn_gamma, bn_beta, bn_mean, bn_var, eps=1e-5):
    """x: (N, C, H, W); conv_w: (1, 2, 7, 7) f32; bn_*: (1,) f32.  BN in eval mode."""
    N, C, H, W = x.shape
    HW = H * W

    # TODO(synk): BatchNorm is applied with eval-mode running statistics (PyTorch eval default);
    #             training-mode batch statistics are not implemented.
    bn_scale = bn_gamma / jnp.sqrt(bn_var + eps)                              # (1,)
    w_eff = (conv_w * bn_scale[:, None, None, None]).astype(jnp.float32)      # (1, 2, 7, 7)
    b_eff = (bn_beta - bn_mean * bn_scale).astype(jnp.float32)                # (1,)
    params = jnp.concatenate([w_eff.reshape(-1), b_eff.reshape(-1)])          # (99,) -> SMEM

    # Host-precomputed boundary masks: 7 column-validity rows + 7 row-validity rows, f32.
    pos = np.arange(HW)
    row_i, col_i = pos // W, pos % W
    col_masks = [((col_i + kj - PAD >= 0) & (col_i + kj - PAD < W)) for kj in range(KSIZE)]
    row_masks = [((row_i + ki - PAD >= 0) & (row_i + ki - PAD < H)) for ki in range(KSIZE)]
    masks = jnp.asarray(np.stack(col_masks + row_masks).astype(np.float32))   # (14, HW)

    # --- per-generation block / VMEM budgeting -------------------------------------------------
    itemsize = jnp.dtype(x.dtype).itemsize
    vmem_cap = _vmem_capacity_bytes()
    if vmem_cap <= (64 << 20):        # v7x: 64 MiB per TensorCore
        target_block, vmem_budget_cap = 8 << 20, 48 << 20
    else:                             # v5e / v6e: 128 MiB physical VMEM
        target_block, vmem_budget_cap = 12 << 20, 100 << 20

    sub = 8 * max(1, 4 // itemsize)                      # sublane multiple for this dtype
    padded_c = -(-C // sub) * sub                        # e.g. C=4 f32 pads to 8 sublanes
    padded_hw = -(-HW // 128) * 128
    per_img = padded_c * padded_hw * itemsize            # padded VMEM footprint per image
    per_img_f32 = padded_c * padded_hw * 4               # possible f32 temp (bf16 pool upcast)
    per_img_cost = 4 * per_img + per_img_f32             # 2x in + 2x out buffers + temp
    headroom = 4 << 20

    nb_target = max(1, target_block // per_img)                       # ~8-12 MiB blocks
    nb_vmem = max(1, (vmem_budget_cap - headroom) // per_img_cost)    # stay inside the budget
    nb_cores = max(1, N // 2)                                         # >=2 grid steps (v7x: 2 TCs)
    nb = int(max(1, min(nb_target, nb_vmem, nb_cores, N)))

    pad_n = (-N) % nb                                    # decouple nb from exact divisors of N
    x_flat = x.reshape(N, C, HW)                         # lane-dense view; contiguous reshape
    if pad_n:
        x_flat = jnp.concatenate(
            [x_flat, jnp.zeros((pad_n, C, HW), x_flat.dtype)], axis=0)
    n_total = N + pad_n

    block_bytes = nb * per_img
    vmem_limit = int(min(vmem_budget_cap,
                         max(16 << 20, 4 * block_bytes + nb * per_img_f32 + headroom)))
    # TODO(synk): a single image larger than the block target would need H-tiling with a 3-row
    #             halo (also useful to feed both v7x TensorCores when N == 1); not implemented.

    c_chunk = C
    for cand in (64, 32, 16, 8):                         # chunk the channel pool for large C
        if C > cand and C % cand == 0:
            c_chunk = cand
            break

    kernel = partial(_spatial_atten_kernel, W=W, c_chunk=c_chunk)

    out = pl.pallas_call(
        kernel,
        out_shape=jax.ShapeDtypeStruct((n_total, C, HW), x.dtype),
        grid_spec=pltpu.PrefetchScalarGridSpec(
            num_scalar_prefetch=1,                       # params -> SMEM
            grid=(n_total // nb,),
            in_specs=[pl.BlockSpec((nb, C, HW), lambda n, p: (n, 0, 0)),
                      pl.BlockSpec((2 * KSIZE, HW), lambda n, p: (0, 0))],
            out_specs=pl.BlockSpec((nb, C, HW), lambda n, p: (n, 0, 0)),
        ),
        compiler_params=pltpu.CompilerParams(
            dimension_semantics=("parallel",),
            vmem_limit_bytes=vmem_limit,
        ),
    )(params, x_flat, masks)
    return out[:N].reshape(N, C, H, W)


def reference(x, conv_w, bn_gamma, bn_beta, bn_mean, bn_var, eps=1e-5):
    """Pure-JAX reference matching the PyTorch module (BN in eval mode)."""
    cmax = jnp.max(x, axis=1, keepdims=True)
    cmean = jnp.mean(x, axis=1, keepdims=True)
    xc = jnp.concatenate([cmax, cmean], axis=1)  # (N, 2, H, W)
    y = jax.lax.conv_general_dilated(
        xc, conv_w, window_strides=(1, 1), padding=[(PAD, PAD), (PAD, PAD)],
        dimension_numbers=("NCHW", "OIHW", "NCHW"))
    y = (y - bn_mean[None, :, None, None]) / jnp.sqrt(bn_var[None, :, None, None] + eps)
    y = y * bn_gamma[None, :, None, None] + bn_beta[None, :, None, None]
    return x * jax.nn.sigmoid(y)


if __name__ == "__main__":
    key = jax.random.PRNGKey(0)
    k_x, k_w = jax.random.split(key)

    N, C, H, W = 2, 4, 16, 16
    x = jax.random.normal(k_x, (N, C, H, W), dtype=jnp.float32)

    # Conv2d(2, 1, kernel_size=7, bias=False): deterministic kaiming-uniform-style init.
    fan_in = 2 * KSIZE * KSIZE
    bound = 1.0 / np.sqrt(fan_in)
    conv_w = jax.random.uniform(k_w, (1, 2, KSIZE, KSIZE), jnp.float32, -bound, bound)

    # BatchNorm2d(1) defaults (eval): gamma=1, beta=0, running_mean=0, running_var=1.
    bn_gamma = jnp.ones((1,), jnp.float32)
    bn_beta = jnp.zeros((1,), jnp.float32)
    bn_mean = jnp.zeros((1,), jnp.float32)
    bn_var = jnp.ones((1,), jnp.float32)

    out = spatial_atten(x, conv_w, bn_gamma, bn_beta, bn_mean, bn_var)
    out = jax.block_until_ready(out)

    ref = reference(x, conv_w, bn_gamma, bn_beta, bn_mean, bn_var)
    np.testing.assert_allclose(np.asarray(out), np.asarray(ref), rtol=1e-5, atol=1e-5)
    print("KERNEL_OK")
</pallas_src>

<mosaic_0001>
module attributes {stable_mosaic.version = 11 : i64} {
  func.func @_spatial_atten_kernel(%arg0: i32, %arg1: memref<99xf32, #tpu.memory_space<smem>>, %arg2: memref<1x4x256xf32, #tpu.memory_space<vmem>>, %arg3: memref<14x256xf32, #tpu.memory_space<vmem>>, %arg4: memref<1x4x256xf32, #tpu.memory_space<vmem>>) attributes {dimension_semantics = [#tpu.dimension_semantics<parallel>], iteration_bounds = array<i64: 2>, scalar_prefetch = 1 : i64, scratch_operands = 0 : i64, tpu.core_type = #tpu.core_type<tc>, window_params = [{transform_indices = @transform_0, window_bounds = array<i64: 1, 4, 256>}, {pipeline_mode = #tpu.pipeline_mode<synchronous>, transform_indices = @transform_1, window_bounds = array<i64: 14, 256>}, {transform_indices = @transform_2, window_bounds = array<i64: 1, 4, 256>}]} {
    %c0 = arith.constant 0 : index
    %c0_0 = arith.constant 0 : index
    %c0_1 = arith.constant 0 : index
    %0 = vector.load %arg2[%c0, %c0_0, %c0_1] : memref<1x4x256xf32, #tpu.memory_space<vmem>>, vector<1x4x256xf32>
    %cst = arith.constant dense<0xFF800000> : vector<1x256xf32>
    %1 = vector.multi_reduction <maximumf>, %0, %cst [1] : vector<1x4x256xf32> to vector<1x256xf32>
    %cst_2 = arith.constant dense<0.000000e+00> : vector<1x256xf32>
    %2 = vector.multi_reduction <add>, %0, %cst_2 [1] : vector<1x4x256xf32> to vector<1x256xf32>
    %cst_3 = arith.constant 2.500000e-01 : f32
    %3 = vector.broadcast %cst_3 : f32 to vector<1x256xf32>
    %4 = arith.mulf %2, %3 : vector<1x256xf32>
    %c0_4 = arith.constant 0 : index
    %c0_5 = arith.constant 0 : index
    %5 = vector.load %arg3[%c0_4, %c0_5] : memref<14x256xf32, #tpu.memory_space<vmem>>, vector<1x256xf32>
    %c1 = arith.constant 1 : index
    %c0_6 = arith.constant 0 : index
    %6 = vector.load %arg3[%c1, %c0_6] : memref<14x256xf32, #tpu.memory_space<vmem>>, vector<1x256xf32>
    %c2 = arith.constant 2 : index
    %c0_7 = arith.constant 0 : index
    %7 = vector.load %arg3[%c2, %c0_7] : memref<14x256xf32, #tpu.memory_space<vmem>>, vector<1x256xf32>
    %c3 = arith.constant 3 : index
    %c0_8 = arith.constant 0 : index
    %8 = vector.load %arg3[%c3, %c0_8] : memref<14x256xf32, #tpu.memory_space<vmem>>, vector<1x256xf32>
    %c4 = arith.constant 4 : index
    %c0_9 = arith.constant 0 : index
    %9 = vector.load %arg3[%c4, %c0_9] : memref<14x256xf32, #tpu.memory_space<vmem>>, vector<1x256xf32>
    %c5 = arith.constant 5 : index
    %c0_10 = arith.constant 0 : index
    %10 = vector.load %arg3[%c5, %c0_10] : memref<14x256xf32, #tpu.memory_space<vmem>>, vector<1x256xf32>
    %c6 = arith.constant 6 : index
    %c0_11 = arith.constant 0 : index
    %11 = vector.load %arg3[%c6, %c0_11] : memref<14x256xf32, #tpu.memory_space<vmem>>, vector<1x256xf32>
    %c7 = arith.constant 7 : index
    %c0_12 = arith.constant 0 : index
    %12 = vector.load %arg3[%c7, %c0_12] : memref<14x256xf32, #tpu.memory_space<vmem>>, vector<1x256xf32>
    %c8 = arith.constant 8 : index
    %c0_13 = arith.constant 0 : index
    %13 = vector.load %arg3[%c8, %c0_13] : memref<14x256xf32, #tpu.memory_space<vmem>>, vector<1x256xf32>
    %c9 = arith.constant 9 : index
    %c0_14 = arith.constant 0 : index
    %14 = vector.load %arg3[%c9, %c0_14] : memref<14x256xf32, #tpu.memory_space<vmem>>, vector<1x256xf32>
    %c10 = arith.constant 10 : index
    %c0_15 = arith.constant 0 : index
    %15 = vector.load %arg3[%c10, %c0_15] : memref<14x256xf32, #tpu.memory_space<vmem>>, vector<1x256xf32>
    %c11 = arith.constant 11 : index
    %c0_16 = arith.constant 0 : index
    %16 = vector.load %arg3[%c11, %c0_16] : memref<14x256xf32, #tpu.memory_space<vmem>>, vector<1x256xf32>
    %c12 = arith.constant 12 : index
    %c0_17 = arith.constant 0 : index
    %17 = vector.load %arg3[%c12, %c0_17] : memref<14x256xf32, #tpu.memory_space<vmem>>, vector<1x256xf32>
    %c13 = arith.constant 13 : index
    %c0_18 = arith.constant 0 : index
    %18 = vector.load %arg3[%c13, %c0_18] : memref<14x256xf32, #tpu.memory_space<vmem>>, vector<1x256xf32>
    %c98 = arith.constant 98 : index
    %19 = memref.load %arg1[%c98] : memref<99xf32, #tpu.memory_space<smem>>
    %cst_19 = arith.constant 0.000000e+00 : f32
    %20 = vector.broadcast %cst_19 : f32 to vector<1x256xf32>
    %21 = vector.broadcast %19 : f32 to vector<1x256xf32>
    %22 = arith.addf %20, %21 : vector<1x256xf32>
    %c3_i32 = arith.constant 3 : i32
    %23 = tpu.dynamic_rotate %1 by %c3_i32 dim 1 : vector<1x256xf32>, i32 -> vector<1x256xf32>
    %24 = arith.mulf %23, %5 : vector<1x256xf32>
    %c2_i32 = arith.constant 2 : i32
    %25 = tpu.dynamic_rotate %1 by %c2_i32 dim 1 : vector<1x256xf32>, i32 -> vector<1x256xf32>
    %26 = arith.mulf %25, %6 : vector<1x256xf32>
    %c1_i32 = arith.constant 1 : i32
    %27 = tpu.dynamic_rotate %1 by %c1_i32 dim 1 : vector<1x256xf32>, i32 -> vector<1x256xf32>
    %28 = arith.mulf %27, %7 : vector<1x256xf32>
    %29 = arith.mulf %1, %8 : vector<1x256xf32>
    %c255_i32 = arith.constant 255 : i32
    %30 = tpu.dynamic_rotate %1 by %c255_i32 dim 1 : vector<1x256xf32>, i32 -> vector<1x256xf32>
    %31 = arith.mulf %30, %9 : vector<1x256xf32>
    %c254_i32 = arith.constant 254 : i32
    %32 = tpu.dynamic_rotate %1 by %c254_i32 dim 1 : vector<1x256xf32>, i32 -> vector<1x256xf32>
    %33 = arith.mulf %32, %10 : vector<1x256xf32>
    %c253_i32 = arith.constant 253 : i32
    %34 = tpu.dynamic_rotate %1 by %c253_i32 dim 1 : vector<1x256xf32>, i32 -> vector<1x256xf32>
    %35 = arith.mulf %34, %11 : vector<1x256xf32>
    %c0_20 = arith.constant 0 : index
    %36 = memref.load %arg1[%c0_20] : memref<99xf32, #tpu.memory_space<smem>>
    %37 = vector.broadcast %36 : f32 to vector<1x256xf32>
    %38 = arith.mulf %24, %37 : vector<1x256xf32>
    %c1_21 = arith.constant 1 : index
    %39 = memref.load %arg1[%c1_21] : memref<99xf32, #tpu.memory_space<smem>>
    %40 = vector.broadcast %39 : f32 to vector<1x256xf32>
    %41 = arith.mulf %26, %40 : vector<1x256xf32>
    %42 = arith.addf %38, %41 : vector<1x256xf32>
    %c2_22 = arith.constant 2 : index
    %43 = memref.load %arg1[%c2_22] : memref<99xf32, #tpu.memory_space<smem>>
    %44 = vector.broadcast %43 : f32 to vector<1x256xf32>
    %45 = arith.mulf %28, %44 : vector<1x256xf32>
    %46 = arith.addf %42, %45 : vector<1x256xf32>
    %c3_23 = arith.constant 3 : index
    %47 = memref.load %arg1[%c3_23] : memref<99xf32, #tpu.memory_space<smem>>
    %48 = vector.broadcast %47 : f32 to vector<1x256xf32>
    %49 = arith.mulf %29, %48 : vector<1x256xf32>
    %50 = arith.addf %46, %49 : vector<1x256xf32>
    %c4_24 = arith.constant 4 : index
    %51 = memref.load %arg1[%c4_24] : memref<99xf32, #tpu.memory_space<smem>>
    %52 = vector.broadcast %51 : f32 to vector<1x256xf32>
    %53 = arith.mulf %31, %52 : vector<1x256xf32>
    %54 = arith.addf %50, %53 : vector<1x256xf32>
    %c5_25 = arith.constant 5 : index
    %55 = memref.load %arg1[%c5_25] : memref<99xf32, #tpu.memory_space<smem>>
    %56 = vector.broadcast %55 : f32 to vector<1x256xf32>
    %57 = arith.mulf %33, %56 : vector<1x256xf32>
    %58 = arith.addf %54, %57 : vector<1x256xf32>
    %c6_26 = arith.constant 6 : index
    %59 = memref.load %arg1[%c6_26] : memref<99xf32, #tpu.memory_space<smem>>
    %60 = vector.broadcast %59 : f32 to vector<1x256xf32>
    %61 = arith.mulf %35, %60 : vector<1x256xf32>
    %62 = arith.addf %58, %61 : vector<1x256xf32>
    %c48_i32 = arith.constant 48 : i32
    %63 = tpu.dynamic_rotate %62 by %c48_i32 dim 1 : vector<1x256xf32>, i32 -> vector<1x256xf32>
    %64 = arith.mulf %63, %12 : vector<1x256xf32>
    %65 = arith.addf %22, %64 : vector<1x256xf32>
    %c7_27 = arith.constant 7 : index
    %66 = memref.load %arg1[%c7_27] : memref<99xf32, #tpu.memory_space<smem>>
    %67 = vector.broadcast %66 : f32 to vector<1x256xf32>
    %68 = arith.mulf %24, %67 : vector<1x256xf32>
    %c8_28 = arith.constant 8 : index
    %69 = memref.load %arg1[%c8_28] : memref<99xf32, #tpu.memory_space<smem>>
    %70 = vector.broadcast %69 : f32 to vector<1x256xf32>
    %71 = arith.mulf %26, %70 : vector<1x256xf32>
    %72 = arith.addf %68, %71 : vector<1x256xf32>
    %c9_29 = arith.constant 9 : index
    %73 = memref.load %arg1[%c9_29] : memref<99xf32, #tpu.memory_space<smem>>
    %74 = vector.broadcast %73 : f32 to vector<1x256xf32>
    %75 = arith.mulf %28, %74 : vector<1x256xf32>
    %76 = arith.addf %72, %75 : vector<1x256xf32>
    %c10_30 = arith.constant 10 : index
    %77 = memref.load %arg1[%c10_30] : memref<99xf32, #tpu.memory_space<smem>>
    %78 = vector.broadcast %77 : f32 to vector<1x256xf32>
    %79 = arith.mulf %29, %78 : vector<1x256xf32>
    %80 = arith.addf %76, %79 : vector<1x256xf32>
    %c11_31 = arith.constant 11 : index
    %81 = memref.load %arg1[%c11_31] : memref<99xf32, #tpu.memory_space<smem>>
    %82 = vector.broadcast %81 : f32 to vector<1x256xf32>
    %83 = arith.mulf %31, %82 : vector<1x256xf32>
    %84 = arith.addf %80, %83 : vector<1x256xf32>
    %c12_32 = arith.constant 12 : index
    %85 = memref.load %arg1[%c12_32] : memref<99xf32, #tpu.memory_space<smem>>
    %86 = vector.broadcast %85 : f32 to vector<1x256xf32>
    %87 = arith.mulf %33, %86 : vector<1x256xf32>
    %88 = arith.addf %84, %87 : vector<1x256xf32>
    %c13_33 = arith.constant 13 : index
    %89 = memref.load %arg1[%c13_33] : memref<99xf32, #tpu.memory_space<smem>>
    %90 = vector.broadcast %89 : f32 to vector<1x256xf32>
    %91 = arith.mulf %35, %90 : vector<1x256xf32>
    %92 = arith.addf %88, %91 : vector<1x256xf32>
    %c32_i32 = arith.constant 32 : i32
    %93 = tpu.dynamic_rotate %92 by %c32_i32 dim 1 : vector<1x256xf32>, i32 -> vector<1x256xf32>
    %94 = arith.mulf %93, %13 : vector<1x256xf32>
    %95 = arith.addf %65, %94 : vector<1x256xf32>
    %c14 = arith.constant 14 : index
    %96 = memref.load %arg1[%c14] : memref<99xf32, #tpu.memory_space<smem>>
    %97 = vector.broadcast %96 : f32 to vector<1x256xf32>
    %98 = arith.mulf %24, %97 : vector<1x256xf32>
    %c15 = arith.constant 15 : index
    %99 = memref.load %arg1[%c15] : memref<99xf32, #tpu.memory_space<smem>>
    %100 = vector.broadcast %99 : f32 to vector<1x256xf32>
    %101 = arith.mulf %26, %100 : vector<1x256xf32>
    %102 = arith.addf %98, %101 : vector<1x256xf32>
    %c16 = arith.constant 16 : index
    %103 = memref.load %arg1[%c16] : memref<99xf32, #tpu.memory_space<smem>>
    %104 = vector.broadcast %103 : f32 to vector<1x256xf32>
    %105 = arith.mulf %28, %104 : vector<1x256xf32>
    %106 = arith.addf %102, %105 : vector<1x256xf32>
    %c17 = arith.constant 17 : index
    %107 = memref.load %arg1[%c17] : memref<99xf32, #tpu.memory_space<smem>>
    %108 = vector.broadcast %107 : f32 to vector<1x256xf32>
    %109 = arith.mulf %29, %108 : vector<1x256xf32>
    %110 = arith.addf %106, %109 : vector<1x256xf32>
    %c18 = arith.constant 18 : index
    %111 = memref.load %arg1[%c18] : memref<99xf32, #tpu.memory_space<smem>>
    %112 = vector.broadcast %111 : f32 to vector<1x256xf32>
    %113 = arith.mulf %31, %112 : vector<1x256xf32>
    %114 = arith.addf %110, %113 : vector<1x256xf32>
    %c19 = arith.constant 19 : index
    %115 = memref.load %arg1[%c19] : memref<99xf32, #tpu.memory_space<smem>>
    %116 = vector.broadcast %115 : f32 to vector<1x256xf32>
    %117 = arith.mulf %33, %116 : vector<1x256xf32>
    %118 = arith.addf %114, %117 : vector<1x256xf32>
    %c20 = arith.constant 20 : index
    %119 = memref.load %arg1[%c20] : memref<99xf32, #tpu.memory_space<smem>>
    %120 = vector.broadcast %119 : f32 to vector<1x256xf32>
    %121 = arith.mulf %35, %120 : vector<1x256xf32>
    %122 = arith.addf %118, %121 : vector<1x256xf32>
    %c16_i32 = arith.constant 16 : i32
    %123 = tpu.dynamic_rotate %122 by %c16_i32 dim 1 : vector<1x256xf32>, i32 -> vector<1x256xf32>
    %124 = arith.mulf %123, %14 : vector<1x256xf32>
    %125 = arith.addf %95, %124 : vector<1x256xf32>
    %c21 = arith.constant 21 : index
    %126 = memref.load %arg1[%c21] : memref<99xf32, #tpu.memory_space<smem>>
    %127 = vector.broadcast %126 : f32 to vector<1x256xf32>
    %128 = arith.mulf %24, %127 : vector<1x256xf32>
    %c22 = arith.constant 22 : index
    %129 = memref.load %arg1[%c22] : memref<99xf32, #tpu.memory_space<smem>>
    %130 = vector.broadcast %129 : f32 to vector<1x256xf32>
    %131 = arith.mulf %26, %130 : vector<1x256xf32>
    %132 = arith.addf %128, %131 : vector<1x256xf32>
    %c23 = arith.constant 23 : index
    %133 = memref.load %arg1[%c23] : memref<99xf32, #tpu.memory_space<smem>>
    %134 = vector.broadcast %133 : f32 to vector<1x256xf32>
    %135 = arith.mulf %28, %134 : vector<1x256xf32>
    %136 = arith.addf %132, %135 : vector<1x256xf32>
    %c24 = arith.constant 24 : index
    %137 = memref.load %arg1[%c24] : memref<99xf32, #tpu.memory_space<smem>>
    %138 = vector.broadcast %137 : f32 to vector<1x256xf32>
    %139 = arith.mulf %29, %138 : vector<1x256xf32>
    %140 = arith.addf %136, %139 : vector<1x256xf32>
    %c25 = arith.constant 25 : index
    %141 = memref.load %arg1[%c25] : memref<99xf32, #tpu.memory_space<smem>>
    %142 = vector.broadcast %141 : f32 to vector<1x256xf32>
    %143 = arith.mulf %31, %142 : vector<1x256xf32>
    %144 = arith.addf %140, %143 : vector<1x256xf32>
    %c26 = arith.constant 26 : index
    %145 = memref.load %arg1[%c26] : memref<99xf32, #tpu.memory_space<smem>>
    %146 = vector.broadcast %145 : f32 to vector<1x256xf32>
    %147 = arith.mulf %33, %146 : vector<1x256xf32>
    %148 = arith.addf %144, %147 : vector<1x256xf32>
    %c27 = arith.constant 27 : index
    %149 = memref.load %arg1[%c27] : memref<99xf32, #tpu.memory_space<smem>>
    %150 = vector.broadcast %149 : f32 to vector<1x256xf32>
    %151 = arith.mulf %35, %150 : vector<1x256xf32>
    %152 = arith.addf %148, %151 : vector<1x256xf32>
    %153 = arith.mulf %152, %15 : vector<1x256xf32>
    %154 = arith.addf %125, %153 : vector<1x256xf32>
    %c28 = arith.constant 28 : index
    %155 = memref.load %arg1[%c28] : memref<99xf32, #tpu.memory_space<smem>>
    %156 = vector.broadcast %155 : f32 to vector<1x256xf32>
    %157 = arith.mulf %24, %156 : vector<1x256xf32>
    %c29 = arith.constant 29 : index
    %158 = memref.load %arg1[%c29] : memref<99xf32, #tpu.memory_space<smem>>
    %159 = vector.broadcast %158 : f32 to vector<1x256xf32>
    %160 = arith.mulf %26, %159 : vector<1x256xf32>
    %161 = arith.addf %157, %160 : vector<1x256xf32>
    %c30 = arith.constant 30 : index
    %162 = memref.load %arg1[%c30] : memref<99xf32, #tpu.memory_space<smem>>
    %163 = vector.broadcast %162 : f32 to vector<1x256xf32>
    %164 = arith.mulf %28, %163 : vector<1x256xf32>
    %165 = arith.addf %161, %164 : vector<1x256xf32>
    %c31 = arith.constant 31 : index
    %166 = memref.load %arg1[%c31] : memref<99xf32, #tpu.memory_space<smem>>
    %167 = vector.broadcast %166 : f32 to vector<1x256xf32>
    %168 = arith.mulf %29, %167 : vector<1x256xf32>
    %169 = arith.addf %165, %168 : vector<1x256xf32>
    %c32 = arith.constant 32 : index
    %170 = memref.load %arg1[%c32] : memref<99xf32, #tpu.memory_space<smem>>
    %171 = vector.broadcast %170 : f32 to vector<1x256xf32>
    %172 = arith.mulf %31, %171 : vector<1x256xf32>
    %173 = arith.addf %169, %172 : vector<1x256xf32>
    %c33 = arith.constant 33 : index
    %174 = memref.load %arg1[%c33] : memref<99xf32, #tpu.memory_space<smem>>
    %175 = vector.broadcast %174 : f32 to vector<1x256xf32>
    %176 = arith.mulf %33, %175 : vector<1x256xf32>
    %177 = arith.addf %173, %176 : vector<1x256xf32>
    %c34 = arith.constant 34 : index
    %178 = memref.load %arg1[%c34] : memref<99xf32, #tpu.memory_space<smem>>
    %179 = vector.broadcast %178 : f32 to vector<1x256xf32>
    %180 = arith.mulf %35, %179 : vector<1x256xf32>
    %181 = arith.addf %177, %180 : vector<1x256xf32>
    %c240_i32 = arith.constant 240 : i32
    %182 = tpu.dynamic_rotate %181 by %c240_i32 dim 1 : vector<1x256xf32>, i32 -> vector<1x256xf32>
    %183 = arith.mulf %182, %16 : vector<1x256xf32>
    %184 = arith.addf %154, %183 : vector<1x256xf32>
    %c35 = arith.constant 35 : index
    %185 = memref.load %arg1[%c35] : memref<99xf32, #tpu.memory_space<smem>>
    %186 = vector.broadcast %185 : f32 to vector<1x256xf32>
    %187 = arith.mulf %24, %186 : vector<1x256xf32>
    %c36 = arith.constant 36 : index
    %188 = memref.load %arg1[%c36] : memref<99xf32, #tpu.memory_space<smem>>
    %189 = vector.broadcast %188 : f32 to vector<1x256xf32>
    %190 = arith.mulf %26, %189 : vector<1x256xf32>
    %191 = arith.addf %187, %190 : vector<1x256xf32>
    %c37 = arith.constant 37 : index
    %192 = memref.load %arg1[%c37] : memref<99xf32, #tpu.memory_space<smem>>
    %193 = vector.broadcast %192 : f32 to vector<1x256xf32>
    %194 = arith.mulf %28, %193 : vector<1x256xf32>
    %195 = arith.addf %191, %194 : vector<1x256xf32>
    %c38 = arith.constant 38 : index
    %196 = memref.load %arg1[%c38] : memref<99xf32, #tpu.memory_space<smem>>
    %197 = vector.broadcast %196 : f32 to vector<1x256xf32>
    %198 = arith.mulf %29, %197 : vector<1x256xf32>
    %199 = arith.addf %195, %198 : vector<1x256xf32>
    %c39 = arith.constant 39 : index
    %200 = memref.load %arg1[%c39] : memref<99xf32, #tpu.memory_space<smem>>
    %201 = vector.broadcast %200 : f32 to vector<1x256xf32>
    %202 = arith.mulf %31, %201 : vector<1x256xf32>
    %203 = arith.addf %199, %202 : vector<1x256xf32>
    %c40 = arith.constant 40 : index
    %204 = memref.load %arg1[%c40] : memref<99xf32, #tpu.memory_space<smem>>
    %205 = vector.broadcast %204 : f32 to vector<1x256xf32>
    %206 = arith.mulf %33, %205 : vector<1x256xf32>
    %207 = arith.addf %203, %206 : vector<1x256xf32>
    %c41 = arith.constant 41 : index
    %208 = memref.load %arg1[%c41] : memref<99xf32, #tpu.memory_space<smem>>
    %209 = vector.broadcast %208 : f32 to vector<1x256xf32>
    %210 = arith.mulf %35, %209 : vector<1x256xf32>
    %211 = arith.addf %207, %210 : vector<1x256xf32>
    %c224_i32 = arith.constant 224 : i32
    %212 = tpu.dynamic_rotate %211 by %c224_i32 dim 1 : vector<1x256xf32>, i32 -> vector<1x256xf32>
    %213 = arith.mulf %212, %17 : vector<1x256xf32>
    %214 = arith.addf %184, %213 : vector<1x256xf32>
    %c42 = arith.constant 42 : index
    %215 = memref.load %arg1[%c42] : memref<99xf32, #tpu.memory_space<smem>>
    %216 = vector.broadcast %215 : f32 to vector<1x256xf32>
    %217 = arith.mulf %24, %216 : vector<1x256xf32>
    %c43 = arith.constant 43 : index
    %218 = memref.load %arg1[%c43] : memref<99xf32, #tpu.memory_space<smem>>
    %219 = vector.broadcast %218 : f32 to vector<1x256xf32>
    %220 = arith.mulf %26, %219 : vector<1x256xf32>
    %221 = arith.addf %217, %220 : vector<1x256xf32>
    %c44 = arith.constant 44 : index
    %222 = memref.load %arg1[%c44] : memref<99xf32, #tpu.memory_space<smem>>
    %223 = vector.broadcast %222 : f32 to vector<1x256xf32>
    %224 = arith.mulf %28, %223 : vector<1x256xf32>
    %225 = arith.addf %221, %224 : vector<1x256xf32>
    %c45 = arith.constant 45 : index
    %226 = memref.load %arg1[%c45] : memref<99xf32, #tpu.memory_space<smem>>
    %227 = vector.broadcast %226 : f32 to vector<1x256xf32>
    %228 = arith.mulf %29, %227 : vector<1x256xf32>
    %229 = arith.addf %225, %228 : vector<1x256xf32>
    %c46 = arith.constant 46 : index
    %230 = memref.load %arg1[%c46] : memref<99xf32, #tpu.memory_space<smem>>
    %231 = vector.broadcast %230 : f32 to vector<1x256xf32>
    %232 = arith.mulf %31, %231 : vector<1x256xf32>
    %233 = arith.addf %229, %232 : vector<1x256xf32>
    %c47 = arith.constant 47 : index
    %234 = memref.load %arg1[%c47] : memref<99xf32, #tpu.memory_space<smem>>
    %235 = vector.broadcast %234 : f32 to vector<1x256xf32>
    %236 = arith.mulf %33, %235 : vector<1x256xf32>
    %237 = arith.addf %233, %236 : vector<1x256xf32>
    %c48 = arith.constant 48 : index
    %238 = memref.load %arg1[%c48] : memref<99xf32, #tpu.memory_space<smem>>
    %239 = vector.broadcast %238 : f32 to vector<1x256xf32>
    %240 = arith.mulf %35, %239 : vector<1x256xf32>
    %241 = arith.addf %237, %240 : vector<1x256xf32>
    %c208_i32 = arith.constant 208 : i32
    %242 = tpu.dynamic_rotate %241 by %c208_i32 dim 1 : vector<1x256xf32>, i32 -> vector<1x256xf32>
    %243 = arith.mulf %242, %18 : vector<1x256xf32>
    %244 = arith.addf %214, %243 : vector<1x256xf32>
    %c3_i32_34 = arith.constant 3 : i32
    %245 = tpu.dynamic_rotate %4 by %c3_i32_34 dim 1 : vector<1x256xf32>, i32 -> vector<1x256xf32>
    %246 = arith.mulf %245, %5 : vector<1x256xf32>
    %c2_i32_35 = arith.constant 2 : i32
    %247 = tpu.dynamic_rotate %4 by %c2_i32_35 dim 1 : vector<1x256xf32>, i32 -> vector<1x256xf32>
    %248 = arith.mulf %247, %6 : vector<1x256xf32>
    %c1_i32_36 = arith.constant 1 : i32
    %249 = tpu.dynamic_rotate %4 by %c1_i32_36 dim 1 : vector<1x256xf32>, i32 -> vector<1x256xf32>
    %250 = arith.mulf %249, %7 : vector<1x256xf32>
    %251 = arith.mulf %4, %8 : vector<1x256xf32>
    %c255_i32_37 = arith.constant 255 : i32
    %252 = tpu.dynamic_rotate %4 by %c255_i32_37 dim 1 : vector<1x256xf32>, i32 -> vector<1x256xf32>
    %253 = arith.mulf %252, %9 : vector<1x256xf32>
    %c254_i32_38 = arith.constant 254 : i32
    %254 = tpu.dynamic_rotate %4 by %c254_i32_38 dim 1 : vector<1x256xf32>, i32 -> vector<1x256xf32>
    %255 = arith.mulf %254, %10 : vector<1x256xf32>
    %c253_i32_39 = arith.constant 253 : i32
    %256 = tpu.dynamic_rotate %4 by %c253_i32_39 dim 1 : vector<1x256xf32>, i32 -> vector<1x256xf32>
    %257 = arith.mulf %256, %11 : vector<1x256xf32>
    %c49 = arith.constant 49 : index
    %258 = memref.load %arg1[%c49] : memref<99xf32, #tpu.memory_space<smem>>
    %259 = vector.broadcast %258 : f32 to vector<1x256xf32>
    %260 = arith.mulf %246, %259 : vector<1x256xf32>
    %c50 = arith.constant 50 : index
    %261 = memref.load %arg1[%c50] : memref<99xf32, #tpu.memory_space<smem>>
    %262 = vector.broadcast %261 : f32 to vector<1x256xf32>
    %263 = arith.mulf %248, %262 : vector<1x256xf32>
    %264 = arith.addf %260, %263 : vector<1x256xf32>
    %c51 = arith.constant 51 : index
    %265 = memref.load %arg1[%c51] : memref<99xf32, #tpu.memory_space<smem>>
    %266 = vector.broadcast %265 : f32 to vector<1x256xf32>
    %267 = arith.mulf %250, %266 : vector<1x256xf32>
    %268 = arith.addf %264, %267 : vector<1x256xf32>
    %c52 = arith.constant 52 : index
    %269 = memref.load %arg1[%c52] : memref<99xf32, #tpu.memory_space<smem>>
    %270 = vector.broadcast %269 : f32 to vector<1x256xf32>
    %271 = arith.mulf %251, %270 : vector<1x256xf32>
    %272 = arith.addf %268, %271 : vector<1x256xf32>
    %c53 = arith.constant 53 : index
    %273 = memref.load %arg1[%c53] : memref<99xf32, #tpu.memory_space<smem>>
    %274 = vector.broadcast %273 : f32 to vector<1x256xf32>
    %275 = arith.mulf %253, %274 : vector<1x256xf32>
    %276 = arith.addf %272, %275 : vector<1x256xf32>
    %c54 = arith.constant 54 : index
    %277 = memref.load %arg1[%c54] : memref<99xf32, #tpu.memory_space<smem>>
    %278 = vector.broadcast %277 : f32 to vector<1x256xf32>
    %279 = arith.mulf %255, %278 : vector<1x256xf32>
    %280 = arith.addf %276, %279 : vector<1x256xf32>
    %c55 = arith.constant 55 : index
    %281 = memref.load %arg1[%c55] : memref<99xf32, #tpu.memory_space<smem>>
    %282 = vector.broadcast %281 : f32 to vector<1x256xf32>
    %283 = arith.mulf %257, %282 : vector<1x256xf32>
    %284 = arith.addf %280, %283 : vector<1x256xf32>
    %c48_i32_40 = arith.constant 48 : i32
    %285 = tpu.dynamic_rotate %284 by %c48_i32_40 dim 1 : vector<1x256xf32>, i32 -> vector<1x256xf32>
    %286 = arith.mulf %285, %12 : vector<1x256xf32>
    %287 = arith.addf %244, %286 : vector<1x256xf32>
    %c56 = arith.constant 56 : index
    %288 = memref.load %arg1[%c56] : memref<99xf32, #tpu.memory_space<smem>>
    %289 = vector.broadcast %288 : f32 to vector<1x256xf32>
    %290 = arith.mulf %246, %289 : vector<1x256xf32>
    %c57 = arith.constant 57 : index
    %291 = memref.load %arg1[%c57] : memref<99xf32, #tpu.memory_space<smem>>
    %292 = vector.broadcast %291 : f32 to vector<1x256xf32>
    %293 = arith.mulf %248, %292 : vector<1x256xf32>
    %294 = arith.addf %290, %293 : vector<1x256xf32>
    %c58 = arith.constant 58 : index
    %295 = memref.load %arg1[%c58] : memref<99xf32, #tpu.memory_space<smem>>
    %296 = vector.broadcast %295 : f32 to vector<1x256xf32>
    %297 = arith.mulf %250, %296 : vector<1x256xf32>
    %298 = arith.addf %294, %297 : vector<1x256xf32>
    %c59 = arith.constant 59 : index
    %299 = memref.load %arg1[%c59] : memref<99xf32, #tpu.memory_space<smem>>
    %300 = vector.broadcast %299 : f32 to vector<1x256xf32>
    %301 = arith.mulf %251, %300 : vector<1x256xf32>
    %302 = arith.addf %298, %301 : vector<1x256xf32>
    %c60 = arith.constant 60 : index
    %303 = memref.load %arg1[%c60] : memref<99xf32, #tpu.memory_space<smem>>
    %304 = vector.broadcast %303 : f32 to vector<1x256xf32>
    %305 = arith.mulf %253, %304 : vector<1x256xf32>
    %306 = arith.addf %302, %305 : vector<1x256xf32>
    %c61 = arith.constant 61 : index
    %307 = memref.load %arg1[%c61] : memref<99xf32, #tpu.memory_space<smem>>
    %308 = vector.broadcast %307 : f32 to vector<1x256xf32>
    %309 = arith.mulf %255, %308 : vector<1x256xf32>
    %310 = arith.addf %306, %309 : vector<1x256xf32>
    %c62 = arith.constant 62 : index
    %311 = memref.load %arg1[%c62] : memref<99xf32, #tpu.memory_space<smem>>
    %312 = vector.broadcast %311 : f32 to vector<1x256xf32>
    %313 = arith.mulf %257, %312 : vector<1x256xf32>
    %314 = arith.addf %310, %313 : vector<1x256xf32>
    %c32_i32_41 = arith.constant 32 : i32
    %315 = tpu.dynamic_rotate %314 by %c32_i32_41 dim 1 : vector<1x256xf32>, i32 -> vector<1x256xf32>
    %316 = arith.mulf %315, %13 : vector<1x256xf32>
    %317 = arith.addf %287, %316 : vector<1x256xf32>
    %c63 = arith.constant 63 : index
    %318 = memref.load %arg1[%c63] : memref<99xf32, #tpu.memory_space<smem>>
    %319 = vector.broadcast %318 : f32 to vector<1x256xf32>
    %320 = arith.mulf %246, %319 : vector<1x256xf32>
    %c64 = arith.constant 64 : index
    %321 = memref.load %arg1[%c64] : memref<99xf32, #tpu.memory_space<smem>>
    %322 = vector.broadcast %321 : f32 to vector<1x256xf32>
    %323 = arith.mulf %248, %322 : vector<1x256xf32>
    %324 = arith.addf %320, %323 : vector<1x256xf32>
    %c65 = arith.constant 65 : index
    %325 = memref.load %arg1[%c65] : memref<99xf32, #tpu.memory_space<smem>>
    %326 = vector.broadcast %325 : f32 to vector<1x256xf32>
    %327 = arith.mulf %250, %326 : vector<1x256xf32>
    %328 = arith.addf %324, %327 : vector<1x256xf32>
    %c66 = arith.constant 66 : index
    %329 = memref.load %arg1[%c66] : memref<99xf32, #tpu.memory_space<smem>>
    %330 = vector.broadcast %329 : f32 to vector<1x256xf32>
    %331 = arith.mulf %251, %330 : vector<1x256xf32>
    %332 = arith.addf %328, %331 : vector<1x256xf32>
    %c67 = arith.constant 67 : index
    %333 = memref.load %arg1[%c67] : memref<99xf32, #tpu.memory_space<smem>>
    %334 = vector.broadcast %333 : f32 to vector<1x256xf32>
    %335 = arith.mulf %253, %334 : vector<1x256xf32>
    %336 = arith.addf %332, %335 : vector<1x256xf32>
    %c68 = arith.constant 68 : index
    %337 = memref.load %arg1[%c68] : memref<99xf32, #tpu.memory_space<smem>>
    %338 = vector.broadcast %337 : f32 to vector<1x256xf32>
    %339 = arith.mulf %255, %338 : vector<1x256xf32>
    %340 = arith.addf %336, %339 : vector<1x256xf32>
    %c69 = arith.constant 69 : index
    %341 = memref.load %arg1[%c69] : memref<99xf32, #tpu.memory_space<smem>>
    %342 = vector.broadcast %341 : f32 to vector<1x256xf32>
    %343 = arith.mulf %257, %342 : vector<1x256xf32>
    %344 = arith.addf %340, %343 : vector<1x256xf32>
    %c16_i32_42 = arith.constant 16 : i32
    %345 = tpu.dynamic_rotate %344 by %c16_i32_42 dim 1 : vector<1x256xf32>, i32 -> vector<1x256xf32>
    %346 = arith.mulf %345, %14 : vector<1x256xf32>
    %347 = arith.addf %317, %346 : vector<1x256xf32>
    %c70 = arith.constant 70 : index
    %348 = memref.load %arg1[%c70] : memref<99xf32, #tpu.memory_space<smem>>
    %349 = vector.broadcast %348 : f32 to vector<1x256xf32>
    %350 = arith.mulf %246, %349 : vector<1x256xf32>
    %c71 = arith.constant 71 : index
    %351 = memref.load %arg1[%c71] : memref<99xf32, #tpu.memory_space<smem>>
    %352 = vector.broadcast %351 : f32 to vector<1x256xf32>
    %353 = arith.mulf %248, %352 : vector<1x256xf32>
    %354 = arith.addf %350, %353 : vector<1x256xf32>
    %c72 = arith.constant 72 : index
    %355 = memref.load %arg1[%c72] : memref<99xf32, #tpu.memory_space<smem>>
    %356 = vector.broadcast %355 : f32 to vector<1x256xf32>
    %357 = arith.mulf %250, %356 : vector<1x256xf32>
    %358 = arith.addf %354, %357 : vector<1x256xf32>
    %c73 = arith.constant 73 : index
    %359 = memref.load %arg1[%c73] : memref<99xf32, #tpu.memory_space<smem>>
    %360 = vector.broadcast %359 : f32 to vector<1x256xf32>
    %361 = arith.mulf %251, %360 : vector<1x256xf32>
    %362 = arith.addf %358, %361 : vector<1x256xf32>
    %c74 = arith.constant 74 : index
    %363 = memref.load %arg1[%c74] : memref<99xf32, #tpu.memory_space<smem>>
    %364 = vector.broadcast %363 : f32 to vector<1x256xf32>
    %365 = arith.mulf %253, %364 : vector<1x256xf32>
    %366 = arith.addf %362, %365 : vector<1x256xf32>
    %c75 = arith.constant 75 : index
    %367 = memref.load %arg1[%c75] : memref<99xf32, #tpu.memory_space<smem>>
    %368 = vector.broadcast %367 : f32 to vector<1x256xf32>
    %369 = arith.mulf %255, %368 : vector<1x256xf32>
    %370 = arith.addf %366, %369 : vector<1x256xf32>
    %c76 = arith.constant 76 : index
    %371 = memref.load %arg1[%c76] : memref<99xf32, #tpu.memory_space<smem>>
    %372 = vector.broadcast %371 : f32 to vector<1x256xf32>
    %373 = arith.mulf %257, %372 : vector<1x256xf32>
    %374 = arith.addf %370, %373 : vector<1x256xf32>
    %375 = arith.mulf %374, %15 : vector<1x256xf32>
    %376 = arith.addf %347, %375 : vector<1x256xf32>
    %c77 = arith.constant 77 : index
    %377 = memref.load %arg1[%c77] : memref<99xf32, #tpu.memory_space<smem>>
    %378 = vector.broadcast %377 : f32 to vector<1x256xf32>
    %379 = arith.mulf %246, %378 : vector<1x256xf32>
    %c78 = arith.constant 78 : index
    %380 = memref.load %arg1[%c78] : memref<99xf32, #tpu.memory_space<smem>>
    %381 = vector.broadcast %380 : f32 to vector<1x256xf32>
    %382 = arith.mulf %248, %381 : vector<1x256xf32>
    %383 = arith.addf %379, %382 : vector<1x256xf32>
    %c79 = arith.constant 79 : index
    %384 = memref.load %arg1[%c79] : memref<99xf32, #tpu.memory_space<smem>>
    %385 = vector.broadcast %384 : f32 to vector<1x256xf32>
    %386 = arith.mulf %250, %385 : vector<1x256xf32>
    %387 = arith.addf %383, %386 : vector<1x256xf32>
    %c80 = arith.constant 80 : index
    %388 = memref.load %arg1[%c80] : memref<99xf32, #tpu.memory_space<smem>>
    %389 = vector.broadcast %388 : f32 to vector<1x256xf32>
    %390 = arith.mulf %251, %389 : vector<1x256xf32>
    %391 = arith.addf %387, %390 : vector<1x256xf32>
    %c81 = arith.constant 81 : index
    %392 = memref.load %arg1[%c81] : memref<99xf32, #tpu.memory_space<smem>>
    %393 = vector.broadcast %392 : f32 to vector<1x256xf32>
    %394 = arith.mulf %253, %393 : vector<1x256xf32>
    %395 = arith.addf %391, %394 : vector<1x256xf32>
    %c82 = arith.constant 82 : index
    %396 = memref.load %arg1[%c82] : memref<99xf32, #tpu.memory_space<smem>>
    %397 = vector.broadcast %396 : f32 to vector<1x256xf32>
    %398 = arith.mulf %255, %397 : vector<1x256xf32>
    %399 = arith.addf %395, %398 : vector<1x256xf32>
    %c83 = arith.constant 83 : index
    %400 = memref.load %arg1[%c83] : memref<99xf32, #tpu.memory_space<smem>>
    %401 = vector.broadcast %400 : f32 to vector<1x256xf32>
    %402 = arith.mulf %257, %401 : vector<1x256xf32>
    %403 = arith.addf %399, %402 : vector<1x256xf32>
    %c240_i32_43 = arith.constant 240 : i32
    %404 = tpu.dynamic_rotate %403 by %c240_i32_43 dim 1 : vector<1x256xf32>, i32 -> vector<1x256xf32>
    %405 = arith.mulf %404, %16 : vector<1x256xf32>
    %406 = arith.addf %376, %405 : vector<1x256xf32>
    %c84 = arith.constant 84 : index
    %407 = memref.load %arg1[%c84] : memref<99xf32, #tpu.memory_space<smem>>
    %408 = vector.broadcast %407 : f32 to vector<1x256xf32>
    %409 = arith.mulf %246, %408 : vector<1x256xf32>
    %c85 = arith.constant 85 : index
    %410 = memref.load %arg1[%c85] : memref<99xf32, #tpu.memory_space<smem>>
    %411 = vector.broadcast %410 : f32 to vector<1x256xf32>
    %412 = arith.mulf %248, %411 : vector<1x256xf32>
    %413 = arith.addf %409, %412 : vector<1x256xf32>
    %c86 = arith.constant 86 : index
    %414 = memref.load %arg1[%c86] : memref<99xf32, #tpu.memory_space<smem>>
    %415 = vector.broadcast %414 : f32 to vector<1x256xf32>
    %416 = arith.mulf %250, %415 : vector<1x256xf32>
    %417 = arith.addf %413, %416 : vector<1x256xf32>
    %c87 = arith.constant 87 : index
    %418 = memref.load %arg1[%c87] : memref<99xf32, #tpu.memory_space<smem>>
    %419 = vector.broadcast %418 : f32 to vector<1x256xf32>
    %420 = arith.mulf %251, %419 : vector<1x256xf32>
    %421 = arith.addf %417, %420 : vector<1x256xf32>
    %c88 = arith.constant 88 : index
    %422 = memref.load %arg1[%c88] : memref<99xf32, #tpu.memory_space<smem>>
    %423 = vector.broadcast %422 : f32 to vector<1x256xf32>
    %424 = arith.mulf %253, %423 : vector<1x256xf32>
    %425 = arith.addf %421, %424 : vector<1x256xf32>
    %c89 = arith.constant 89 : index
    %426 = memref.load %arg1[%c89] : memref<99xf32, #tpu.memory_space<smem>>
    %427 = vector.broadcast %426 : f32 to vector<1x256xf32>
    %428 = arith.mulf %255, %427 : vector<1x256xf32>
    %429 = arith.addf %425, %428 : vector<1x256xf32>
    %c90 = arith.constant 90 : index
    %430 = memref.load %arg1[%c90] : memref<99xf32, #tpu.memory_space<smem>>
    %431 = vector.broadcast %430 : f32 to vector<1x256xf32>
    %432 = arith.mulf %257, %431 : vector<1x256xf32>
    %433 = arith.addf %429, %432 : vector<1x256xf32>
    %c224_i32_44 = arith.constant 224 : i32
    %434 = tpu.dynamic_rotate %433 by %c224_i32_44 dim 1 : vector<1x256xf32>, i32 -> vector<1x256xf32>
    %435 = arith.mulf %434, %17 : vector<1x256xf32>
    %436 = arith.addf %406, %435 : vector<1x256xf32>
    %c91 = arith.constant 91 : index
    %437 = memref.load %arg1[%c91] : memref<99xf32, #tpu.memory_space<smem>>
    %438 = vector.broadcast %437 : f32 to vector<1x256xf32>
    %439 = arith.mulf %246, %438 : vector<1x256xf32>
    %c92 = arith.constant 92 : index
    %440 = memref.load %arg1[%c92] : memref<99xf32, #tpu.memory_space<smem>>
    %441 = vector.broadcast %440 : f32 to vector<1x256xf32>
    %442 = arith.mulf %248, %441 : vector<1x256xf32>
    %443 = arith.addf %439, %442 : vector<1x256xf32>
    %c93 = arith.constant 93 : index
    %444 = memref.load %arg1[%c93] : memref<99xf32, #tpu.memory_space<smem>>
    %445 = vector.broadcast %444 : f32 to vector<1x256xf32>
    %446 = arith.mulf %250, %445 : vector<1x256xf32>
    %447 = arith.addf %443, %446 : vector<1x256xf32>
    %c94 = arith.constant 94 : index
    %448 = memref.load %arg1[%c94] : memref<99xf32, #tpu.memory_space<smem>>
    %449 = vector.broadcast %448 : f32 to vector<1x256xf32>
    %450 = arith.mulf %251, %449 : vector<1x256xf32>
    %451 = arith.addf %447, %450 : vector<1x256xf32>
    %c95 = arith.constant 95 : index
    %452 = memref.load %arg1[%c95] : memref<99xf32, #tpu.memory_space<smem>>
    %453 = vector.broadcast %452 : f32 to vector<1x256xf32>
    %454 = arith.mulf %253, %453 : vector<1x256xf32>
    %455 = arith.addf %451, %454 : vector<1x256xf32>
    %c96 = arith.constant 96 : index
    %456 = memref.load %arg1[%c96] : memref<99xf32, #tpu.memory_space<smem>>
    %457 = vector.broadcast %456 : f32 to vector<1x256xf32>
    %458 = arith.mulf %255, %457 : vector<1x256xf32>
    %459 = arith.addf %455, %458 : vector<1x256xf32>
    %c97 = arith.constant 97 : index
    %460 = memref.load %arg1[%c97] : memref<99xf32, #tpu.memory_space<smem>>
    %461 = vector.broadcast %460 : f32 to vector<1x256xf32>
    %462 = arith.mulf %257, %461 : vector<1x256xf32>
    %463 = arith.addf %459, %462 : vector<1x256xf32>
    %c208_i32_45 = arith.constant 208 : i32
    %464 = tpu.dynamic_rotate %463 by %c208_i32_45 dim 1 : vector<1x256xf32>, i32 -> vector<1x256xf32>
    %465 = arith.mulf %464, %18 : vector<1x256xf32>
    %466 = arith.addf %436, %465 : vector<1x256xf32>
    %467 = arith.negf %466 : vector<1x256xf32>
    %468 = math.exp %467 : vector<1x256xf32>
    %cst_46 = arith.constant 1.000000e+00 : f32
    %469 = vector.broadcast %cst_46 : f32 to vector<1x256xf32>
    %470 = arith.addf %469, %468 : vector<1x256xf32>
    %471 = arith.divf %469, %470 : vector<1x256xf32>
    %c0_47 = arith.constant 0 : index
    %c0_48 = arith.constant 0 : index
    %c0_49 = arith.constant 0 : index
    %472 = vector.load %arg2[%c0_47, %c0_48, %c0_49] : memref<1x4x256xf32, #tpu.memory_space<vmem>>, vector<1x4x256xf32>
    %473 = vector.shape_cast %471 : vector<1x256xf32> to vector<1x1x256xf32>
    %474 = vector.broadcast %473 : vector<1x1x256xf32> to vector<1x4x256xf32>
    %475 = arith.mulf %472, %474 : vector<1x4x256xf32>
    %c0_50 = arith.constant 0 : index
    %c0_51 = arith.constant 0 : index
    %c0_52 = arith.constant 0 : index
    %476 = vector.load %arg4[%c0_50, %c0_51, %c0_52] : memref<1x4x256xf32, #tpu.memory_space<vmem>>, vector<1x4x256xf32>
    tpu.vector_store %arg4[%c0_50, %c0_51, %c0_52], %475 {strides = array<i32>} : memref<1x4x256xf32, #tpu.memory_space<vmem>>, vector<1x4x256xf32>,
    return
  }
  func.func @transform_0(%arg0: i32, %arg1: memref<99xf32, #tpu.memory_space<smem>>) -> (i32, i32, i32) {
    %c0_i32 = arith.constant 0 : i32
    %c0_i32_0 = arith.constant 0 : i32
    %c0_i32_1 = arith.constant 0 : i32
    return %arg0, %c0_i32, %c0_i32_0 : i32, i32, i32
  }
  func.func @transform_1(%arg0: i32, %arg1: memref<99xf32, #tpu.memory_space<smem>>) -> (i32, i32) {
    %c0_i32 = arith.constant 0 : i32
    %c0_i32_0 = arith.constant 0 : i32
    %c0_i32_1 = arith.constant 0 : i32
    return %c0_i32, %c0_i32_0 : i32, i32
  }
  func.func @transform_2(%arg0: i32, %arg1: memref<99xf32, #tpu.memory_space<smem>>) -> (i32, i32, i32) {
    %c0_i32 = arith.constant 0 : i32
    %c0_i32_0 = arith.constant 0 : i32
    %c0_i32_1 = arith.constant 0 : i32
    return %arg0, %c0_i32, %c0_i32_0 : i32, i32, i32
  }
}

</mosaic_0001>

<bundles_post_ra>
// kernel: tpu_custom_call.1
= control target key start
LH: loop header
LB: loop body
LE: loop exit
PB: predicated region body
PF: predicated region fallthrough
CT: control target
= control target key end

     0   :  { %s1656_s12 = smov [#allocation3]   ;;  %s3195_s0 = inlined_call_operand.hbm [shape: f32[99], index: 0, kind: input, shape index: {}]   ;;  %s3196_s1 = inlined_call_operand.hbm [shape: f32[2,4,256], index: 1, kind: input, shape index: {}]   ;;  %s3197_s2 = inlined_call_operand.hbm [shape: f32[14,256], index: 2, kind: input, shape index: {}]   ;;  %s3198_s3 = inlined_call_operand.hbm [shape: f32[2,4,256], index: 3, kind: output, shape index: {}]  }
   0x1   :  { %3334 = sst [smem:[#allocation129_spill]] %s3196_s1 }
   0x2   :  { %3335 = sst [smem:[#allocation130_spill]] %s3197_s2 }
   0x3   :  { %3336 = sst [smem:[#allocation131_spill]] %s3198_s3 }
   0x4   :  { %9 = dma.hbm_to_smem %s3195_s0, 16, %s1656_s12, [#allocation2] }
   0x5   :  { %1626 = dma.done.wait [#allocation2], 16 }
   0x6   :  { %1627 = vsyncadd [#allocation2], 4294967280 }
   0x7   :  { %11 = sfence }
   0x8   :  { %12 = vsyncpa [#allocation5], 0 }
   0x9   :  { %14 = vsyncpa [#allocation5 + $0x1], 0 }
   0xa   :  { %15 = vsyncpa [#allocation8], 0 }
   0xb   :  { %16 = vsyncpa [#allocation6], 0 }
   0xc   :  { %18 = vsyncpa [#allocation6 + $0x1], 0  ;;  %s1697_s15 = smov 0   ;;  %s1699_s16 = smov 0  }
   0xd   :  { %s1701_s17 = smov 0   ;;  %s1703_s18 = smov 0  }
   0xe LB: > { %3337 = sst [smem:[#allocation14_spill]] %s1642_s15  ;;  %s1718_s0 = sadd.s32 4294967295, %s1654_s18   ;;  %s1654_s18 = sphi %s1703_s18, %s3744_s18   ;;  %s1650_s17 = sphi %s1701_s17, %s3747_s17   ;;  %s1646_s16 = sphi %s1699_s16, %s3746_s16   ;;  %s1642_s15 = sphi %s1697_s15, %s3745_s15  }
   0xf   : > { %3338 = sst [smem:[#allocation15_spill]] %s1646_s16  ;;  %s1322_s19 = sadd.s32 4294967294, %s1654_s18  }
  0x10   : > { %3339 = sst [smem:[#allocation16_spill]] %s1650_s17  ;;  %p44_p0 = scmp.ne.s32.totalorder %s1646_s16, %s1642_s15 }
  0x11   : > { %3340 = sst [smem:[#allocation17_spill]] %s1654_s18  ;;  %p3199_p1 = scmp.eq.s32.totalorder %s1718_s0, 0 }
  0x12   : > { %3341 = sst [smem:[#allocation18_spill]] %s1718_s0  ;;  %p95_p3 = scmp.eq.s32.totalorder %s1322_s19, 1 }
  0x13   : > { %p1727_p4 = por %p3199_p1, %p44_p0  ;;  %p1323_p5 = scmp.ge.s32.totalorder %s1654_s18, 1 }
  0x14   : > { %p1732_p6 = por %p95_p3, %p44_p0  ;;  %p102_p7 = scmp.lt.s32.totalorder %s1654_s18, 3 }
  0x15   : > { %s3342_s20 = scalar_select %p1727_p4, 1, 0 }
  0x16   : > { %s3343_s21 = scalar_select %p1732_p6, 1, 0 }
  0x17   : > { %p1737_p8 = pnand %p1323_p5, %p102_p7  ;;  %s1657_s23 = smov [#allocation7]  }
  0x18   : > { %3344 = sst [smem:[#allocation19_spill]] %s3343_s21  ;;  %s114_s24 = sshll.u32 %s1657_s23, 4  ;;  %s115_s24 = int_to_ptr.vmem [resolvable:$true] %s114_s24 }
  0x19   : > { %s3345_s22 = scalar_select %p1737_p8, 1, 0 }
  0x1a   : > { %p1448_p9 = pneg %p1737_p8  ;;  %s1751_s26 = sadd.s32 1, %s1654_s18  }
  0x1b   : > { %3347 = sst [smem:[#allocation20_spill]] %s1751_s26  ;;  %s31_s27 = sadd.s32 1, %s1650_s17 }
  0x1c   : > { %p1746_p11 = pnand %p1448_p9, %p3199_p1  ;;  %s28_s28 = ssub.s32 %s1654_s18, %s1751_s26 }
  0x1d   : > { %s1541_s29 = scalar_lea.vmem %s115_s24, 512  ;;  %p1549_p5 = scmp.lt.s32.totalorder %s115_s24, %s115_s24 }
  0x1e   : > { %p1532_p12 = pneg %p1746_p11  ;;  %p1542_p13 = scmp.ne.s32.totalorder %s115_s24, %s1541_s29 }
  0x1f   : > { %p1550_p7 = scmp.lt.s32.totalorder %s1541_s29, %s1541_s29 }
  0x20   : > { %p1544_p0 = pnand %p1542_p13, %p1532_p12 }
  0x21   : > { %p1551_p10 = por %p1550_p7, %p1549_p5 }
  0x22   : > { %p1545_p3 = pneg %p1544_p0 }
  0x24   : > { %p1552_p2 = pnand %p1551_p10, %p1545_p3 }
  0x26   : > { %1555 = shalt.err (!%p1552_p2)
}
  0x27   : > { %s1658_s30 = smov 256   ;;  %s1659_s4 = smov 16  }
  0x28   : > { %s3348_s2 = sld [smem:[#allocation130_spill]]  ;;  %p29_p9 = scmp.eq.s32.totalorder %s28_s28, 0 }
  0x29   : > { %p38_p12 = scmp.ne.s32.totalorder %s1650_s17, %s1646_s16  ;;  %p39_p10 = scmp.eq.s32.totalorder %s1654_s18, 0 }
  0x2a   : > { %p1461_p2 = scmp.lt.s32.totalorder %s1654_s18, 2  ;;  %p3350_p0 = scmp.eq.s32.totalorder %s1718_s0, 1 }
  0x2b   : > { %s1768_s7 = scalar_select %p29_p9, %s1650_s17, %s31_s27  }
  0x2c   : > { %p40_p13 = por %p39_p10, %p38_p12  ;;  %p1772_p3 = por %p3350_p0, %p38_p12 }
  0x2d   : > { %3349 = sst [smem:[#allocation21_spill]] %s1768_s7  ;;  %s128_s9 = sand.u32 1, %s1650_s17  }
  0x2e   : > { %1451 = dma.hbm_to_vmem [thread:$0]  (!%p1746_p11), %s3348_s2, 512, %s115_s24, [#allocation8], %s1658_s30, %s1658_s30, %s1659_s4  }
  0x2f   : > { %s3351_s8 = scalar_select %p1772_p3, 1, 0 }
  0x30   : > { %s1438_s10 = sshll.u32 %s1654_s18, 7  ;;  %s1326_s11 = sshll.u32 %s128_s9, 3 }
  0x31   : > { %3352 = sst [smem:[#allocation22_spill]] %s3351_s8  ;;  %s132_s19 = scalar_lea.vmem [#allocation4], %s1326_s11 }
  0x32   : > { %s3353_s1 = sld [smem:[#allocation129_spill]]  ;;  %s140_s23 = sshll.u32 %s132_s19, 4  ;;  %s141_s23 = int_to_ptr.vmem [resolvable:$true] %s140_s23 }
  0x33   : > { %p1783_p11 = pnand %p1461_p2, %p40_p13  ;;  %s129_s25 = scalar_lea.sflag [#allocation5], %s128_s9 }
  0x35   : > { %p1558_p7 = pneg %p1783_p11 }
  0x38   : > { %s1781_s14 = scalar_lea.hbm %s3353_s1, %s1438_s10  ;;  %s1561_s30 = scalar_lea.hbm %s3353_s1, 256 }
  0x39   : > { %s1556_s27 = scalar_lea.hbm %s1781_s14, 128  ;;  %p1562_p10 = scmp.lt.s32.totalorder %s1781_s14, %s3353_s1 }
  0x3a   : > { %p1557_p5 = scmp.ne.s32.totalorder %s1781_s14, %s1556_s27  ;;  %p1563_p2 = scmp.lt.s32.totalorder %s1561_s30, %s1556_s27 }
  0x3c   : > { %p1559_p9 = pnand %p1558_p7, %p1557_p5  ;;  %p1564_p13 = por %p1563_p2, %p1562_p10 }
  0x3e   : > { %p1560_p12 = pneg %p1559_p9 }
  0x40   : > { %p1565_p0 = pnand %p1564_p13, %p1560_p12 }
  0x42   : > { %1568 = shalt.err (!%p1565_p0)
}
  0x43   : > { %s1569_s6 = scalar_lea.vmem %s141_s23, 128  ;;  %s1660_s9 = smov [#allocation4]  }
  0x44   : > { %p1570_p1 = scmp.ne.s32.totalorder %s141_s23, %s1569_s6  ;;  %s1574_s10 = sshll.u32 %s1660_s9, 4  ;;  %s1575_s10 = int_to_ptr.vmem [resolvable:$false] %s1574_s10 }
  0x45   : > { %s1576_s11 = scalar_lea.vmem %s1575_s10, 256  ;;  %p1577_p5 = scmp.lt.s32.totalorder %s141_s23, %s1575_s10 }
  0x46   : > { %p1572_p6 = pnand %p1570_p1, %p1558_p7  ;;  %p1578_p9 = scmp.lt.s32.totalorder %s1576_s11, %s1569_s6 }
  0x48   : > { %p1573_p3 = pneg %p1572_p6  ;;  %p1579_p4 = por %p1578_p9, %p1577_p5 }
  0x4a   : > { %p1580_p8 = pnand %p1579_p4, %p1573_p3 }
  0x4c   : > { %1583 = shalt.err (!%p1580_p8)
}
  0x4d   : > { %1455 = dma.hbm_to_vmem [thread:$0]  (!%p1783_p11), %s1781_s14, 128, %s141_s23, %s129_s25  }
  0x4e   : > { %p3355_p12 = scmp.ne.s32.totalorder %s3345_s22, 0 }
  0x50   : > { %149 = sbr.rel (%p3355_p12) target bundleno = 543 (0x21f), region = 28 }
  0x55   : > { %s1804_s12 = sand.u32 1, %s1646_s16   ;;  %p3358_p1 = scmp.ne.s32.totalorder %s3342_s20, 0 }
  0x56   : > { %3356 = sst [smem:[#allocation23_spill]] %s1804_s12  ;;  %s3203_s13 = sshll.u32 %s1804_s12, 3 }
  0x57   : > { %s152_s19 = scalar_lea.sflag [#allocation5], %s1804_s12  ;;  %s1810_s27 = scalar_lea.vmem [#allocation4], %s3203_s13 }
  0x58   : > { %3357 = sst [smem:[#allocation24_spill]] %s1810_s27 }
  0x59   : > { %1629 = dma.done.wait (%p3358_p1), %s152_s19, 128  }
  0x5a   : > { %1631 = vsyncadd (%p3358_p1), %s152_s19, 4294967168  ;;  %p3359_p4 = scmp.eq.s32.totalorder %s1718_s0, 0 }
  0x5c   : > { %1633 = dma.done.wait (%p3359_p4), [#allocation8], 512   ;;  %p3360_p6 = pmov %p3359_p4 }
  0x5d   : > { %vm184_vm0 = vcmask 1043456   ;;  %v180_v0 = vld [vmem:[%s1810_s27] sm:$0xff]  ;;  %s1661_s20 = smov 2   ;;  %s1662_s22 = smov 3   ;;  %v249_v32 = vlaneseq }
  0x5e   : > { %1635 = vsyncadd (%p3360_p6), [#allocation8], 4294966784  ;;  %v185_v1 = vsel %vm184_vm0, %v180_v0, -inf  ;;  %v182_v2 = vcombine.high %v180_v0, %v180_v0  ;;  %v199_v10 = vsel %vm184_vm0, %v180_v0, 0.0  ;;  %s1663_s14 = smov 1   ;;  %s1664_s23 = smov 127  }
  0x5f   : > { %v186_v3 = vrot.slane %v185_v1, 4  ;;  %v200_v16 = vrot.slane %v199_v10, 4  ;;  %s1665_s24 = smov 126   ;;  %s1666_s25 = smov 125   ;;  %v256_v33 = vshrl.u32 %v249_v32, 7  ;;  %v1971_v40 = vand.u32 127, %v249_v32 }
  0x60   : > { %v192_v4 = vsel %vm184_vm0, %v182_v2, -inf  ;;  %v206_v9 = vsel %vm184_vm0, %v182_v2, 0.0  ;;  %s1853_s28 = sld [smem:[#allocation3 + $0x2]]  ;;  %v217_v34 = vld [vmem:[#allocation7 + $0x1] ss:$8 sm:$0x3] }
  0x61   : > { %v187_v5 = vmax.f32 %v185_v1, %v186_v3  ;;  %v193_v6 = vrot.slane %v192_v4, 4  ;;  %v207_v15 = vrot.slane %v206_v9, 4  ;;  %v201_v21 = vadd.f32 %v200_v16, %v199_v10  ;;  %s1855_s29 = sld [smem:[#allocation3 + $0x9]]  ;;  %v219_v36 = vld [vmem:[#allocation7 + $0x2] ss:$8 sm:$0x3] }
  0x62   : > { %s1857_s30 = sld [smem:[#allocation3 + $0x1]]  ;;  %v1961_v35 = vsub.s32 0, %v256_v33  ;;  %v1965_v37 = vsub.s32 1, %v256_v33  ;;  %v221_v38 = vld [vmem:[#allocation7 + $0x3] ss:$8 sm:$0x3] }
  0x63   : > { %v188_v7 = vrot.slane %v187_v5, 2  ;;  %v194_v8 = vmax.f32 %v192_v4, %v193_v6  ;;  %v208_v20 = vadd.f32 %v207_v15, %v206_v9  ;;  %v202_v23 = vrot.slane %v201_v21, 2  ;;  %s1859_s4 = sld [smem:[#allocation3 + $0x4]]  ;;  %v223_v39 = vld [vmem:[#allocation7 + $0x4] ss:$8 sm:$0x3] }
  0x64   : > { %s1863_s5 = sld [smem:[#allocation3 + $0x8]]  ;;  %3407 = vst [vmem:[#allocation71_spill] sm:$0xff] %v1961_v35  ;;  %3408 = vst [vmem:[#allocation72_spill] sm:$0xff] %v1965_v37  ;;  %v1974_v41 = vrot.slane %v217_v34, %v1961_v35  ;;  %v225_v42 = vld [vmem:[#allocation7 + $0x5] ss:$8 sm:$0x3]  ;;  %v1979_v43 = vrot.slane %v217_v34, %v1965_v37  ;;  %v1982_v44 = vrot.slane %v219_v36, %v1961_v35 }
  0x65   : > { %v189_v11 = vmax.f32 %v187_v5, %v188_v7  ;;  %v195_v12 = vrot.slane %v194_v8, 2  ;;  %v209_v22 = vrot.slane %v208_v20, 2  ;;  %v203_v25 = vadd.f32 %v202_v23, %v201_v21  ;;  %s1865_s6 = sld [smem:[#allocation3 + $0xb]]  ;;  %v227_v50 = vld [vmem:[#allocation7 + $0x6] ss:$8 sm:$0x3] }
  0x66   : > { %3361 = sst [smem:[#allocation25_spill]] %s1853_s28  ;;  %v1985_v45 = vrot.slane %v221_v38, %v1961_v35  ;;  %v1988_v46 = vrot.slane %v221_v38, %v1965_v37  ;;  %v1993_v47 = vrot.slane %v219_v36, %v1965_v37  ;;  %v1996_v48 = vrot.slane %v223_v39, %v1961_v35  ;;  %v215_v53 = vld [vmem:[#allocation7] ss:$8 sm:$0x3] }
  0x67   : > { %v190_v13 = vrot.slane %v189_v11, 1  ;;  %v196_v14 = vmax.f32 %v194_v8, %v195_v12  ;;  %v210_v24 = vadd.f32 %v209_v22, %v208_v20  ;;  %v204_v27 = vrot.slane %v203_v25, 1  ;;  %3362 = sst [smem:[#allocation26_spill]] %s1855_s29 }
  0x68   : > { %3363 = sst [smem:[#allocation27_spill]] %s1857_s30  ;;  %v1999_v49 = vrot.slane %v223_v39, %v1965_v37  ;;  %v3304_v51 = vstv %s1853_s28  ;;  %v2005_v52 = vrot.slane %v225_v42, %v1961_v35  ;;  %v385_v54 = vstv %s1857_s30 }
  0x69   : > { %v1821_v17 = vmax.f32 %v189_v11, %v190_v13  ;;  %v197_v18 = vrot.slane %v196_v14, 1  ;;  %v211_v26 = vrot.slane %v210_v24, 1  ;;  %v205_v29 = vadd.f32 %v204_v27, %v203_v25  ;;  %3364 = sst [smem:[#allocation28_spill]] %s1859_s4 }
  0x6a   : > { %3365 = sst [smem:[#allocation29_spill]] %s1863_s5  ;;  %3412 = vst [vmem:[#allocation76_spill] sm:$0xff] %v2005_v52  ;;  %v2013_v57 = vrot.slane %v225_v42, %v1965_v37  ;;  %v447_v58 = vstv %s1863_s5  ;;  %v2021_v61 = vrot.slane %v227_v50, %v1961_v35  ;;  %v2024_v62 = vrot.slane %v227_v50, %v1965_v37 }
  0x6b   : > { %267 = vrot.lane.b32.xlu1 %v1821_v17, %s1661_s20  ;;  %245 = vrot.lane.b32.xlu0 %v1821_v17, %s1662_s22  ;;  %v1826_v19 = vmax.f32 %v196_v14, %v197_v18  ;;  %v212_v28 = vadd.f32 %v211_v26, %v210_v24  ;;  %v1841_v31 = vmul.f32 0.25, %v205_v29  ;;  %3366 = sst [smem:[#allocation30_spill]] %s1865_s6  ;;  %v2028_v63 = vmul.f32 %v1985_v45, %v1821_v17 }
  0x6c   : > { %s1867_s9 = sld [smem:[#allocation3 + $0xf]]  ;;  %3413 = vst [vmem:[#allocation77_spill] sm:$0xff] %v2013_v57  ;;  %3414 = vst [vmem:[#allocation78_spill] sm:$0xff] %v2021_v61  ;;  %v2037_v1 = vrot.slane %v215_v53, %v1961_v35  ;;  %v2045_v5 = vrot.slane %v215_v53, %v1965_v37  ;;  %vm271_vm1 = vcmp.lt.s32.totalorder %v1971_v40, 2  ;;  %vm291_vm2 = vcmp.lt.s32.totalorder %v1971_v40, 1 }
  0x6d   : > { %v1839_v30 = vmul.f32 0.25, %v212_v28  ;;  %s1869_s10 = sld [smem:[#allocation3 + $0x5]]  ;;  %3415 = vst [vmem:[#allocation79_spill] sm:$0xff] %v2024_v62  ;;  %3416 = vst [vmem:[#allocation80_spill] sm:$0xff] %v2028_v63  ;;  %v2032_v0 = vmul.f32 %v1988_v46, %v1826_v19  ;;  %v2122_v42 = vmul.f32 %v1985_v45, %v1841_v31  ;;  %vm324_vm3 = vcmp.lt.s32.totalorder %v1971_v40, 127 }
  0x6e   : > { %s1873_s11 = sld [smem:[#allocation3 + $0xc]]  ;;  %vm344_vm4 = vcmp.lt.s32.totalorder %v1971_v40, 126  ;;  %vm364_vm5 = vcmp.lt.s32.totalorder %v1971_v40, 125  ;;  %vm251_vm6 = vcmp.lt.s32.totalorder %v1971_v40, 3  ;;  %vm424_vm7 = vcmp.lt.s32.totalorder %v1971_v40, 48 }
  0x6f   : > { %287 = vrot.lane.b32.xlu0 %v1821_v17, %s1663_s14  ;;  %269 = vrot.lane.b32.xlu1 %v1826_v19, %s1661_s20  ;;  %s1875_s19 = sld [smem:[#allocation3 + $0x10]]  ;;  %3417 = vst [vmem:[#allocation81_spill] sm:$0xff] %v2032_v0  ;;  %3447 = vst [vmem:[#allocation86_spill] sm:$0xff] %v2122_v42  ;;  %vm486_vm8 = vcmp.lt.s32.totalorder %v1971_v40, 32  ;;  %vm548_vm9 = vcmp.lt.s32.totalorder %v1971_v40, 16  ;;  %vm665_vm10 = vcmp.lt.s32.totalorder %v1971_v40, 112 }
  0x70   : > { %s1887_s13 = sld [smem:[#allocation3 + $0x3]]  ;;  %vm727_vm11 = vcmp.lt.s32.totalorder %v1971_v40, 96  ;;  %vm789_vm12 = vcmp.lt.s32.totalorder %v1971_v40, 80 }
  0x71   : > { %s1889_s1 = sld [smem:[#allocation3 + $0xa]] }
  0x72   : > { %3367 = sst [smem:[#allocation31_spill]] %s1867_s9  ;;  %v509_v60 = vstv %s1867_s9 }
  0x73   : > { %320 = vrot.lane.b32.xlu0 %v1821_v17, %s1664_s23  ;;  %289 = vrot.lane.b32.xlu1 %v1826_v19, %s1663_s14  ;;  %3368 = sst [smem:[#allocation32_spill]] %s1869_s10 }
  0x74   : > { %3369 = sst [smem:[#allocation33_spill]] %s1873_s11 }
  0x75   : > { %3370 = sst [smem:[#allocation34_spill]] %s1875_s19 }
  0x76   : > { %s1891_s2 = sld [smem:[#allocation3 + $0xe]]  ;;  %v397_v2 = vstv %s1887_s13 }
  0x77   : > { %340 = vrot.lane.b32.xlu0 %v1821_v17, %s1665_s24  ;;  %322 = vrot.lane.b32.xlu1 %v1826_v19, %s1664_s23  ;;  %s1895_s7 = sld [smem:[#allocation3 + $0x13]]  ;;  %v459_v4 = vstv %s1889_s1  ;;  %v2059_v13 = vmul.f32 %v397_v2, %v2028_v63  ;;  %v2062_v14 = vmul.f32 %v397_v2, %v2032_v0 }
  0x78   : > { %s1897_s17 = sld [smem:[#allocation3 + $0x14]]  ;;  %v2065_v15 = vmul.f32 %v459_v4, %v2028_v63 }
  0x79   : > { %s1899_s16 = sld [smem:[#allocation3 + $0x1c]] }
  0x7a   : > { %s1901_s26 = sld [smem:[#allocation3 + $0x11]] }
  0x7b   : > { %360 = vrot.lane.b32.xlu0 %v1821_v17, %s1666_s25  ;;  %342 = vrot.lane.b32.xlu1 %v1826_v19, %s1665_s24  ;;  %s1903_s18 = sld [smem:[#allocation3 + $0x1e]]  ;;  %v2071_v17 = vmul.f32 %v459_v4, %v2032_v0 }
  0x7c   : > { %3376 = sst [smem:[#allocation40_spill]] %s1891_s2 }
  0x7d   : > { %3378 = sst [smem:[#allocation42_spill]] %s1895_s7 }
  0x7e   : > { %3379 = sst [smem:[#allocation43_spill]] %s1897_s17 }
  0x7f   : > { %362 = vrot.lane.b32.xlu1 %v1826_v19, %s1666_s25  ;;  %247 = vrot.lane.b32.xlu0 %v1826_v19, %s1662_s22  ;;  %3380 = sst [smem:[#allocation44_spill]] %s1899_s16 }
  0x80   : > { %s1905_s21 = sld [smem:[#allocation3 + $0x20]]  ;;  %v521_v12 = vstv %s1901_s26 }
  0x81   : > { %3381 = sst [smem:[#allocation45_spill]] %s1903_s18  ;;  %v2079_v21 = vmul.f32 %v521_v12, %v2028_v63  ;;  %v2087_v25 = vmul.f32 %v521_v12, %v2032_v0 }
  0x82   : > { %s1907_s15 = sld [smem:[#allocation3 + $0x21]] }
  0x83   : > { %809 = vrot.lane.b32.xlu1 %v1839_v30, %s1662_s22  ;;  %807 = vrot.lane.b32.xlu0 %v1841_v31, %s1662_s22  ;;  %s1879_s22 = sld [smem:[#allocation3]] }
  0x84   : > { %s1909_s3 = sld [smem:[#allocation3 + $0x1f]] }
  0x85   : > { %s1911_s8 = sld [smem:[#allocation3 + $0x22]] }
  0x86   : > { %3382 = sst [smem:[#allocation46_spill]] %s1905_s21 }
  0x87   : > { %817 = vrot.lane.b32.xlu1 %v1839_v30, %s1661_s20  ;;  %815 = vrot.lane.b32.xlu0 %v1841_v31, %s1661_s20  ;;  %s1877_s20 = sld [smem:[#allocation3 + $0x1d]] }
  0x88   : > { %3383 = sst [smem:[#allocation47_spill]] %s1907_s15 }
  0x89   : > { %3372 = sst [smem:[#allocation36_spill]] %s1879_s22 }
  0x8a   : > { %3384 = sst [smem:[#allocation48_spill]] %s1909_s3 }
  0x8b   : > { %825 = vrot.lane.b32.xlu1 %v1839_v30, %s1663_s14  ;;  %823 = vrot.lane.b32.xlu0 %v1841_v31, %s1663_s14  ;;  %s1881_s14 = sld [smem:[#allocation3 + $0x6]] }
  0x8c   : > { %3385 = sst [smem:[#allocation49_spill]] %s1911_s8 }
  0x8d   : > { %3371 = sst [smem:[#allocation35_spill]] %s1877_s20  ;;  %v626_v8 = vstv %s1877_s20 }
  0x8e   : > { %s1913_s27 = sld [smem:[#allocation3 + $0x24]] }
  0x8f   : > { %835 = vrot.lane.b32.xlu1 %v1839_v30, %s1664_s23  ;;  %833 = vrot.lane.b32.xlu0 %v1841_v31, %s1664_s23  ;;  %s1883_s23 = sld [smem:[#allocation3 + $0x7]] }
  0x90   : > { %s1915_s12 = sld [smem:[#allocation3 + $0x23]] }
  0x91   : > { %3373 = sst [smem:[#allocation37_spill]] %s1881_s14 }
  0x92   : > { %s1917_s0 = sld [smem:[#allocation3 + $0x25]] }
  0x93   : > { %843 = vrot.lane.b32.xlu1 %v1839_v30, %s1665_s24  ;;  %841 = vrot.lane.b32.xlu0 %v1841_v31, %s1665_s24  ;;  %s1885_s24 = sld [smem:[#allocation3 + $0xd]] }
  0x94   : > { %3386 = sst [smem:[#allocation50_spill]] %s1913_s27 }
  0x95   : > { %3374 = sst [smem:[#allocation38_spill]] %s1883_s23 }
  0x96   : > { %3387 = sst [smem:[#allocation51_spill]] %s1915_s12 }
  0x97   : > { %851 = vrot.lane.b32.xlu1 %v1839_v30, %s1666_s25  ;;  %849 = vrot.lane.b32.xlu0 %v1841_v31, %s1666_s25  ;;  %s1893_s25 = sld [smem:[#allocation3 + $0x12]] }
  0x98   : > { %3388 = sst [smem:[#allocation52_spill]] %s1917_s0 }
  0x99   : > { %3375 = sst [smem:[#allocation39_spill]] %s1885_s24 }
  0x9a   : > { %s1919_s17 = sld [smem:[#allocation3 + $0x27]] }
  0x9b   : > { %s1921_s16 = sld [smem:[#allocation3 + $0x28]] }
  0x9c   : > { %s1923_s7 = sld [smem:[#allocation3 + $0x26]] }
  0x9d   : > { %3377 = sst [smem:[#allocation41_spill]] %s1893_s25 }
  0x9e   : > { %s1925_s18 = sld [smem:[#allocation3 + $0x29]] }
  0x9f   : > { %s1927_s21 = sld [smem:[#allocation3 + $0x2a]] }
  0xa0   : > { %3389 = sst [smem:[#allocation53_spill]] %s1919_s17 }
  0xa1   : > { %3390 = sst [smem:[#allocation54_spill]] %s1921_s16 }
  0xa2   : > { %s1929_s15 = sld [smem:[#allocation3 + $0x2b]]  ;;  %v700_v28 = vstv %s1923_s7 }
  0xa3   : > { %s1931_s3 = sld [smem:[#allocation3 + $0x2c]]  ;;  %v2112_v53 = vmul.f32 %v700_v28, %v2028_v63  ;;  %v2132_v2 = vmul.f32 %v700_v28, %v2032_v0 }
  0xa4   : > { %3391 = sst [smem:[#allocation55_spill]] %s1925_s18 }
  0xa5   : > { %3392 = sst [smem:[#allocation56_spill]] %s1927_s21  ;;  %3443 = vst [vmem:[#allocation85_spill] sm:$0xff] %v2112_v53  ;;  %3450 = vst [vmem:[#allocation88_spill] sm:$0xff] %v2132_v2 }
  0xa6   : > { %s1933_s8 = sld [smem:[#allocation3 + $0x2e]] }
  0xa7   : > { %s1935_s27 = sld [smem:[#allocation3 + $0x2d]] }
  0xa8   : > { %3393 = sst [smem:[#allocation57_spill]] %s1929_s15 }
  0xa9   : > { %3394 = sst [smem:[#allocation58_spill]] %s1931_s3 }
  0xaa   : > { %s1937_s12 = sld [smem:[#allocation3 + $0x2f]] }
  0xab   : > { %s1939_s0 = sld [smem:[#allocation3 + $0x30]] }
  0xac   : > { %3395 = sst [smem:[#allocation59_spill]] %s1933_s8 }
  0xad   : > { %3396 = sst [smem:[#allocation60_spill]] %s1935_s27 }
  0xae   : > { %s1941_s17 = sld [smem:[#allocation3 + $0x31]] }
  0xaf   : > { %s1943_s16 = sld [smem:[#allocation3 + $0x32]] }
  0xb0   : > { %3397 = sst [smem:[#allocation61_spill]] %s1937_s12 }
  0xb1   : > { %3398 = sst [smem:[#allocation62_spill]] %s1939_s0 }
  0xb2   : > { %s1945_s18 = sld [smem:[#allocation3 + $0x33]] }
  0xb3   : > { %s1947_s21 = sld [smem:[#allocation3 + $0x38]] }
  0xb4   : > { %3399 = sst [smem:[#allocation63_spill]] %s1941_s17 }
  0xb5   : > { %s1949_s15 = sld [smem:[#allocation3 + $0x34]] }
  0xb6   : > { %s1951_s3 = sld [smem:[#allocation3 + $0x35]] }
  0xb7   : > { %s1953_s8 = sld [smem:[#allocation3 + $0x36]] }
  0xb8   : > { %3400 = sst [smem:[#allocation64_spill]] %s1945_s18 }
  0xb9   : > { %3401 = sst [smem:[#allocation65_spill]] %s1947_s21 }
  0xba   : > { %s1955_s27 = sld [smem:[#allocation3 + $0x37]] }
  0xbb   : > { %s1957_s12 = sld [smem:[#allocation3 + $0x39]]  ;;  %v874_v24 = vstv %s1949_s15 }
  0xbc   : > { %3402 = sst [smem:[#allocation66_spill]] %s1951_s3  ;;  %v2156_v11 = vmul.f32 %v874_v24, %v2122_v42 }
  0xbd   : > { %3403 = sst [smem:[#allocation67_spill]] %s1953_s8 }
  0xbe   : > { %s1959_s17 = sld [smem:[#allocation3 + $0x3a]]  ;;  %3456 = vst [vmem:[#allocation91_spill] sm:$0xff] %v2156_v11 }
  0xbf   : > { %s1963_s18 = sld [smem:[#allocation3 + $0x3b]] }
  0xc0   : > { %3404 = sst [smem:[#allocation68_spill]] %s1955_s27 }
  0xc1   : > { %3405 = sst [smem:[#allocation69_spill]] %s1957_s12 }
  0xc2   : > { %s1967_s21 = sld [smem:[#allocation3 + $0x3c]] }
  0xc3   : > { %s1969_s8 = sld [smem:[#allocation3 + $0x3d]] }
  0xc4   : > { %3406 = sst [smem:[#allocation70_spill]] %s1959_s17 }
  0xc5   : > { %s1976_s17 = sld [smem:[#allocation3 + $0x3e]]  ;;  %v924_v16 = vstv %s1963_s18 }
  0xc6   : > { %s2018_s28 = sld [smem:[#allocation3 + $0x42]] }
  0xc7   : > { %s2034_s6 = sld [smem:[#allocation3 + $0x43]] }
  0xc8   : > { %s2042_s4 = sld [smem:[#allocation3 + $0x44]] }
  0xc9   : > { %3409 = sst [smem:[#allocation73_spill]] %s1969_s8 }
  0xca   : > { %s1990_s8 = sld [smem:[#allocation3 + $0x3f]] }
  0xcb   : > { %3410 = sst [smem:[#allocation74_spill]] %s1976_s17 }
  0xcc   : > { %s2002_s17 = sld [smem:[#allocation3 + $0x40]]  ;;  %v974_v10 = vstv %s2018_s28 }
  0xcd   : > { %s3418_s29 = sld [smem:[#allocation48_spill]]  ;;  %v2193_v6 = vmul.f32 %v974_v10, %v2122_v42 }
  0xce   : > { %s2050_s9 = sld [smem:[#allocation3 + $0x45]] }
  0xcf   : > { %s2056_s1 = sld [smem:[#allocation3 + $0x4d]]  ;;  %3470 = vst [vmem:[#allocation95_spill] sm:$0xff] %v2193_v6 }
  0xd0   : > { %3411 = sst [smem:[#allocation75_spill]] %s1990_s8 }
  0xd1   : > { %s2010_s8 = sld [smem:[#allocation3 + $0x41]] }
  0xd2   : > { %s2068_s14 = sld [smem:[#allocation3 + $0x4e]] }
  0xd3   : > { %s3429_s22 = sld [smem:[#allocation50_spill]]  ;;  %v638_v20 = vstv %s3418_s29 }
  0xd4   : > { %3419 = sst [smem:[#allocation48_spill]] %s2050_s9  ;;  %v2095_v29 = vmul.f32 %v638_v20, %v2028_v63  ;;  %v2109_v50 = vmul.f32 %v638_v20, %v2032_v0  ;;  %v2126_v20 = vmul.f32 %v1988_v46, %v1839_v30  ;;  %v2174_v30 = vmul.f32 %v924_v16, %v2122_v42 }
  0xd5   : > { %3423 = sst [smem:[#allocation82_spill]] %s2056_s1 }
  0xd6   : > { %s2076_s20 = sld [smem:[#allocation3 + $0x4f]]  ;;  %3442 = vst [vmem:[#allocation84_spill] sm:$0xff] %v2109_v50  ;;  %3449 = vst [vmem:[#allocation87_spill] sm:$0xff] %v2126_v20  ;;  %v2160_v45 = vmul.f32 %v874_v24, %v2126_v20  ;;  %v2178_v32 = vmul.f32 %v924_v16, %v2126_v20  ;;  %v2200_v24 = vmul.f32 %v974_v10, %v2126_v20 }
  0xd7   : > { %s3432_s1 = sld [smem:[#allocation52_spill]]  ;;  %3463 = vst [vmem:[#allocation93_spill] sm:$0xff] %v2174_v30 }
  0xd8   : > { %3426 = sst [smem:[#allocation83_spill]] %s2068_s14  ;;  %3457 = vst [vmem:[#allocation92_spill] sm:$0xff] %v2160_v45  ;;  %3465 = vst [vmem:[#allocation94_spill] sm:$0xff] %v2178_v32 }
  0xd9   : > { %s2084_s9 = sld [smem:[#allocation3 + $0x50]]  ;;  %v688_v34 = vstv %s3429_s22  ;;  %3471 = vst [vmem:[#allocation96_spill] sm:$0xff] %v2200_v24 }
  0xda   : > { %s3436_s29 = sld [smem:[#allocation60_spill]] }
  0xdb   : > { %s2092_s25 = sld [smem:[#allocation3 + $0x51]] }
  0xdc   : > { %3430 = sst [smem:[#allocation50_spill]] %s2076_s20 }
  0xdd   : > { %s3438_s5 = sld [smem:[#allocation57_spill]]  ;;  %v268_v23 = vpop.permute.xlu1 %267  ;;  %v2182_v28 = vpop.permute.xlu0 %245 }
  0xde   : > { %s2100_s10 = sld [smem:[#allocation3 + $0x52]] }
  0xdf   : > { %s2106_s7 = sld [smem:[#allocation3 + $0x53]]  ;;  %v1068_v22 = vstv %s2084_s9 }
  0xe0   : > { %v762_v4 = vstv %s3436_s29  ;;  %s2116_s23 = sld [smem:[#allocation3 + $0x54]]  ;;  %v2206_v16 = vmul.f32 %v1068_v22, %v2122_v42  ;;  %v2212_v18 = vmul.f32 %v1068_v22, %v2126_v20 }
  0xe1   : > { %s3448_s14 = sld [smem:[#allocation64_spill]]  ;;  %v2140_v31 = vmul.f32 %v762_v4, %v2028_v63  ;;  %v2145_v46 = vmul.f32 %v762_v4, %v2032_v0  ;;  %v288_v19 = vpop.permute.xlu0 %287  ;;  %v270_v33 = vpop.permute.xlu1 %269 }
  0xe2   : > { %s2128_s24 = sld [smem:[#allocation3 + $0x55]]  ;;  %3472 = vst [vmem:[#allocation97_spill] sm:$0xff] %v2206_v16  ;;  %3473 = vst [vmem:[#allocation98_spill] sm:$0xff] %v2212_v18  ;;  %v272_v27 = vsel %vm271_vm1, %v268_v23, %v270_v33  ;;  %v273_v39 = vsel %vm271_vm1, %v270_v33, %v268_v23 }
  0xe3   : > { %s2137_s20 = sld [smem:[#allocation3 + $0x56]]  ;;  %3452 = vst [vmem:[#allocation89_spill] sm:$0xff] %v2140_v31  ;;  %3454 = vst [vmem:[#allocation90_spill] sm:$0xff] %v2145_v46  ;;  %v2222_v12 = vmul.f32 %v1974_v41, %v273_v39  ;;  %v2225_v59 = vmul.f32 %v1979_v43, %v272_v27 }
  0xe4   : > { %s3453_s2 = sld [smem:[#allocation67_spill]] }
  0xe5   : > { %3441 = sst [smem:[#allocation52_spill]] %s2106_s7  ;;  %3475 = vst [vmem:[#allocation99_spill] sm:$0xff] %v2222_v12  ;;  %3476 = vst [vmem:[#allocation100_spill] sm:$0xff] %v2225_v59  ;;  %v321_v39 = vpop.permute.xlu0 %320  ;;  %v290_v27 = vpop.permute.xlu1 %289  ;;  %v2241_v38 = vmul.f32 %v385_v54, %v2222_v12  ;;  %v2257_v26 = vmul.f32 %v385_v54, %v2225_v59  ;;  %v2262_v3 = vmul.f32 %v447_v58, %v2222_v12 }
  0xe6   : > { %3445 = sst [smem:[#allocation60_spill]] %s2116_s23  ;;  %v293_v23 = vsel %vm291_vm2, %v290_v27, %v288_v19  ;;  %v2275_v54 = vmul.f32 %v447_v58, %v2225_v59  ;;  %v2300_v58 = vmul.f32 %v688_v34, %v2222_v12  ;;  %v2310_v36 = vmul.f32 %v688_v34, %v2225_v59 }
  0xe7   : > { %s2147_s19 = sld [smem:[#allocation3 + $0x57]] }
  0xe8   : > { %s2153_s15 = sld [smem:[#allocation3 + $0x58]]  ;;  %3489 = vst [vmem:[#allocation107_spill] sm:$0xff] %v2300_v58  ;;  %3491 = vst [vmem:[#allocation108_spill] sm:$0xff] %v2310_v36 }
  0xe9   : > { %s3458_s0 = sld [smem:[#allocation73_spill]]  ;;  %v341_v7 = vpop.permute.xlu0 %340 }
  0xea   : > { %s3459_s26 = sld [smem:[#allocation74_spill]] }
  0xeb   : > { %s2163_s13 = sld [smem:[#allocation3 + $0x5e]] }
  0xec   : > { %s3461_s30 = sld [smem:[#allocation75_spill]] }
  0xed   : > { %s2170_s18 = sld [smem:[#allocation3 + $0x59]]  ;;  %v1118_v10 = vstv %s2147_s19 }
  0xee   : > { %s3464_s29 = sld [smem:[#allocation48_spill]]  ;;  %v2231_v55 = vmul.f32 %v1118_v10, %v2122_v42  ;;  %v2236_v4 = vmul.f32 %v1118_v10, %v2126_v20  ;;  %v292_v10 = vsel %vm291_vm2, %v288_v19, %v290_v27  ;;  %v2280_v19 = vmul.f32 %v509_v60, %v2222_v12 }
  0xef   : > { %s2180_s3 = sld [smem:[#allocation3 + $0x5a]]  ;;  %v2268_v22 = vmul.f32 %v1993_v47, %v292_v10  ;;  %v2290_v27 = vmul.f32 %v626_v8, %v2222_v12  ;;  %v2295_v10 = vmul.f32 %v626_v8, %v2225_v59  ;;  %v3492_v8 = vstv %s3438_s5 }
  0xf0   : > { %s3467_s27 = sld [smem:[#allocation82_spill]]  ;;  %3478 = vst [vmem:[#allocation101_spill] sm:$0xff] %v2231_v55  ;;  %3479 = vst [vmem:[#allocation102_spill] sm:$0xff] %v2236_v4  ;;  %v2315_v37 = vmul.f32 %v3492_v8, %v2222_v12  ;;  %v3494_v35 = vmov %v3492_v8 }
  0xf1   : > { %3460 = sst [smem:[#allocation57_spill]] %s2163_s13  ;;  %v3296_v9 = vstv %s2163_s13  ;;  %3485 = vst [vmem:[#allocation105_spill] sm:$0xff] %v2268_v22  ;;  %3488 = vst [vmem:[#allocation106_spill] sm:$0xff] %v2295_v10  ;;  %v2320_v0 = vmul.f32 %v3494_v35, %v2225_v59 }
  0xf2   : > { %s3468_s12 = sld [smem:[#allocation83_spill]]  ;;  %v2248_v33 = vmul.f32 %v3296_v9, %v2122_v42  ;;  %v2265_v9 = vmul.f32 %v1982_v44, %v293_v23  ;;  %v2285_v23 = vmul.f32 %v509_v60, %v2225_v59  ;;  %v323_v60 = vpop.permute.xlu1 %322  ;;  %3493 = vst [vmem:[#allocation109_spill] sm:$0xff] %v2315_v37 }
  0xf3   : > { %3462 = sst [smem:[#allocation64_spill]] %s2170_s18  ;;  %3496 = vst [vmem:[#allocation110_spill] sm:$0xff] %v2320_v0  ;;  %v325_v63 = vsel %vm324_vm3, %v321_v39, %v323_v60 }
  0xf4   : > { %s3469_s28 = sld [smem:[#allocation50_spill]]  ;;  %3482 = vst [vmem:[#allocation103_spill] sm:$0xff] %v2248_v33  ;;  %3484 = vst [vmem:[#allocation104_spill] sm:$0xff] %v2265_v9  ;;  %v2305_v56 = vmul.f32 %v3304_v51, %v2265_v9  ;;  %v326_v51 = vsel %vm324_vm3, %v323_v60, %v321_v39  ;;  %v2337_v35 = vmul.f32 %v1996_v48, %v325_v63 }
  0xf5   : > { %3466 = sst [smem:[#allocation67_spill]] %s2180_s3  ;;  %v2340_v59 = vmul.f32 %v1999_v49, %v326_v51  ;;  %s1671_s3 = smov 96  }
  0xf6   : > { %s2188_s11 = sld [smem:[#allocation3 + $0x5b]]  ;;  %3500 = vst [vmem:[#allocation111_spill] sm:$0xff] %v2337_v35  ;;  %v343_v16 = vpop.permute.xlu1 %342 }
  0xf7   : > { %s3483_s18 = sld [smem:[#allocation25_spill]]  ;;  %3501 = vst [vmem:[#allocation112_spill] sm:$0xff] %v2340_v59  ;;  %v345_v45 = vsel %vm344_vm4, %v341_v7, %v343_v16 }
  0xf8   : > { %s3486_s9 = sld [smem:[#allocation26_spill]] }
  0xf9   : > { %s3487_s13 = sld [smem:[#allocation34_spill]] }
  0xfa   : > { %s3490_s19 = sld [smem:[#allocation45_spill]]  ;;  %v363_v2 = vpop.permute.xlu1 %362 }
  0xfb   : > { %s3495_s23 = sld [smem:[#allocation28_spill]] }
  0xfc   : > { %s3497_s7 = sld [smem:[#allocation58_spill]] }
  0xfd   : > { %v3498_v34 = vstv %s3483_s18  ;;  %s3503_s5 = sld [smem:[#allocation30_spill]] }
  0xfe   : > { %v2329_v42 = vmul.f32 %v3498_v34, %v2268_v22  ;;  %v3499_v8 = vstv %s3486_s9  ;;  %s3507_s22 = sld [smem:[#allocation41_spill]] }
  0xff   : > { %v2334_v12 = vmul.f32 %v3499_v8, %v2265_v9  ;;  %v3502_v33 = vmov %v3499_v8  ;;  %v3504_v60 = vstv %s3487_s13  ;;  %s3512_s18 = sld [smem:[#allocation46_spill]] }
 0x100   : > { %v2345_v39 = vmul.f32 %v3502_v33, %v2268_v22  ;;  %v2350_v34 = vmul.f32 %v3504_v60, %v2265_v9  ;;  %v3505_v20 = vmov %v3504_v60  ;;  %v3506_v63 = vstv %s3490_s19  ;;  %v361_v60 = vpop.permute.xlu0 %360  ;;  %s3514_s13 = sld [smem:[#allocation53_spill]] }
 0x101   : > { %v2355_v8 = vmul.f32 %v3505_v20, %v2268_v22  ;;  %v2360_v4 = vmul.f32 %v3506_v63, %v2265_v9  ;;  %v3508_v51 = vmov %v3506_v63  ;;  %v3510_v33 = vstv %s3432_s1  ;;  %s3520_s9 = sld [smem:[#allocation32_spill]] }
 0x102   : > { %v2365_v55 = vmul.f32 %v3508_v51, %v2268_v22  ;;  %v2370_v18 = vmul.f32 %v3510_v33, %v2265_v9  ;;  %v3513_v20 = vstv %s3495_s23  ;;  %v3515_v63 = vmov %v3510_v33  ;;  %s3522_s19 = sld [smem:[#allocation59_spill]] }
 0x103   : > { %v2375_v24 = vmul.f32 %v3513_v20, %v2337_v35  ;;  %v2380_v6 = vmul.f32 %v3515_v63, %v2268_v22  ;;  %v3517_v51 = vstv %s3497_s7  ;;  %v346_v20 = vsel %vm344_vm4, %v343_v16, %v341_v7  ;;  %s3536_s1 = sld [smem:[#allocation33_spill]] }
 0x104   : > { %3509 = vst [vmem:[#allocation113_spill] sm:$0xff] %v2365_v55  ;;  %3511 = vst [vmem:[#allocation114_spill] sm:$0xff] %v2370_v18  ;;  %v2385_v32 = vmul.f32 %v3517_v51, %v2265_v9  ;;  %v3519_v33 = vmov %v3517_v51  ;;  %v3523_v63 = vstv %s3495_s23  ;;  %v3524_v51 = vstv %s3503_s5  ;;  %s3538_s23 = sld [smem:[#allocation42_spill]] }
 0x105   : > { %3516 = vst [vmem:[#allocation115_spill] sm:$0xff] %v2380_v6  ;;  %v2390_v30 = vmul.f32 %v3519_v33, %v2268_v22  ;;  %v2399_v11 = vmul.f32 %v3523_v63, %v2340_v59  ;;  %v2404_v9 = vmul.f32 %v3524_v51, %v2337_v35  ;;  %v2407_v33 = vmul.f32 %v2005_v52, %v345_v45  ;;  %s3544_s7 = sld [smem:[#allocation36_spill]] }
 0x106   : > { %3518 = vst [vmem:[#allocation116_spill] sm:$0xff] %v2385_v32  ;;  %v3526_v22 = vmov %v3524_v51  ;;  %v2425_v63 = vmul.f32 %v2013_v57, %v346_v20  ;;  %v3530_v51 = vstv %s3512_s18  ;;  %v365_v53 = vsel %vm364_vm5, %v361_v60, %v363_v2  ;;  %s3546_s5 = sld [smem:[#allocation47_spill]] }
 0x107   : > { %3521 = vst [vmem:[#allocation117_spill] sm:$0xff] %v2390_v30  ;;  %3525 = vst [vmem:[#allocation118_spill] sm:$0xff] %v2407_v33  ;;  %v2412_v46 = vmul.f32 %v3526_v22, %v2340_v59  ;;  %v3527_v30 = vstv %s3507_s22  ;;  %v2430_v0 = vmul.f32 %v3530_v51, %v2337_v35  ;;  %v3532_v45 = vmov %v3530_v51  ;;  %s3547_s22 = sld [smem:[#allocation37_spill]] }
 0x108   : > { %v2417_v31 = vmul.f32 %v3527_v30, %v2337_v35  ;;  %v3528_v7 = vmov %v3527_v30  ;;  %3529 = vst [vmem:[#allocation119_spill] sm:$0xff] %v2425_v63  ;;  %v2435_v32 = vmul.f32 %v3532_v45, %v2340_v59  ;;  %v3534_v22 = vstv %s3514_s13  ;;  %s3548_s18 = sld [smem:[#allocation38_spill]] }
 0x109   : > { %v2422_v16 = vmul.f32 %v3528_v7, %v2340_v59  ;;  %3531 = vst [vmem:[#allocation120_spill] sm:$0xff] %v2430_v0  ;;  %v2440_v30 = vmul.f32 %v3534_v22, %v2337_v35  ;;  %v248_v7 = vpop.permute.xlu0 %247  ;;  %v3537_v20 = vstv %s3520_s9  ;;  %v3539_v51 = vmov %v3534_v22  ;;  %s3553_s13 = sld [smem:[#allocation39_spill]] }
 0x10a   : > { %3533 = vst [vmem:[#allocation121_spill] sm:$0xff] %v2435_v32  ;;  %v2445_v37 = vmul.f32 %v3537_v20, %v2407_v33  ;;  %v2450_v6 = vmul.f32 %v3539_v51, %v2340_v59  ;;  %v3541_v45 = vstv %s3522_s19  ;;  %v366_v20 = vsel %vm364_vm5, %v363_v2, %v361_v60  ;;  %s3570_s19 = sld [smem:[#allocation43_spill]] }
 0x10b   : > { %3535 = vst [vmem:[#allocation122_spill] sm:$0xff] %v2440_v30  ;;  %v2455_v32 = vmul.f32 %v3541_v45, %v2337_v35  ;;  %v3543_v22 = vmov %v3541_v45  ;;  %v252_v51 = vsel %vm251_vm6, %v2182_v28, %v248_v7  ;;  %v253_v45 = vsel %vm251_vm6, %v248_v7, %v2182_v28 }
 0x10c   : > { %3540 = vst [vmem:[#allocation123_spill] sm:$0xff] %v2450_v6  ;;  %v2460_v30 = vmul.f32 %v3543_v22, %v2340_v59  ;;  %v2473_v22 = vmul.f32 %v2021_v61, %v365_v53  ;;  %v2476_v59 = vmul.f32 %v2024_v62, %v366_v20  ;;  %v2479_v2 = vmul.f32 %v2037_v1, %v253_v45  ;;  %v810_v45 = vpop.permute.xlu1 %809 }
 0x10d   : > { %3542 = vst [vmem:[#allocation124_spill] sm:$0xff] %v2455_v32  ;;  %v2482_v60 = vmul.f32 %v2045_v5, %v252_v51  ;;  %v3549_v35 = vstv %s3520_s9  ;;  %v3550_v28 = vstv %s3536_s1  ;;  %v3552_v20 = vstv %s3538_s23  ;;  %v808_v51 = vpop.permute.xlu0 %807  ;;  %s3555_s9 = sld [smem:[#allocation40_spill]] }
 0x10e   : > { %3545 = vst [vmem:[#allocation125_spill] sm:$0xff] %v2460_v30  ;;  %v411_v30 = vmul.f32 %v3549_v35, %v2425_v63  ;;  %v472_v7 = vmul.f32 %v3550_v28, %v2407_v33  ;;  %v3551_v53 = vmov %v3550_v28  ;;  %v2498_v6 = vmul.f32 %v3552_v20, %v2407_v33  ;;  %s3572_s1 = sld [smem:[#allocation44_spill]] }
 0x10f   : > { %v2493_v32 = vmul.f32 %v3551_v53, %v2425_v63  ;;  %v3554_v50 = vstv %s3544_s7  ;;  %v3557_v36 = vmov %v3552_v20  ;;  %v3559_v53 = vstv %s3546_s5  ;;  %s2568_s23 = sld [smem:[#allocation3 + $0x5c]] }
 0x110   : > { %v382_v35 = vmul.f32 %v3554_v50, %v2479_v2  ;;  %v3556_v62 = vmov %v3554_v50  ;;  %v2509_v61 = vmul.f32 %v3557_v36, %v2425_v63  ;;  %v2514_v18 = vmul.f32 %v3559_v53, %v2407_v33  ;;  %s2595_s7 = sld [smem:[#allocation3 + $0x5d]] }
 0x111   : > { %v383_v28 = vmul.f32 %v3556_v62, %v2482_v60  ;;  %v812_v20 = vsel %vm251_vm6, %v810_v45, %v808_v51  ;;  %v3561_v55 = vstv %s3547_s22  ;;  %v3562_v52 = vstv %s3548_s18  ;;  %s3577_s5 = sld [smem:[#allocation49_spill]] }
 0x112   : > { %3558 = vst [vmem:[#allocation126_spill] sm:$0xff] %v2509_v61  ;;  %3560 = vst [vmem:[#allocation127_spill] sm:$0xff] %v2514_v18  ;;  %v416_v57 = vmul.f32 %v3561_v55, %v2473_v22  ;;  %v444_v50 = vmul.f32 %v3562_v52, %v2479_v2  ;;  %v3563_v62 = vmov %v3559_v53  ;;  %v811_v36 = vsel %vm251_vm6, %v808_v51, %v810_v45  ;;  %v816_v51 = vpop.permute.xlu0 %815  ;;  %s3579_s22 = sld [smem:[#allocation51_spill]] }
 0x113   : > { %v2527_v58 = vmul.f32 %v3563_v62, %v2425_v63  ;;  %v388_v53 = vadd.f32 %v2241_v38, %v382_v35  ;;  %v389_v18 = vadd.f32 %v2257_v26, %v383_v28  ;;  %v3565_v33 = vmov %v3561_v55  ;;  %v818_v38 = vpop.permute.xlu1 %817 }
 0x114   : > { %v417_v10 = vmul.f32 %v3565_v33, %v2476_v59  ;;  %v450_v55 = vadd.f32 %v2262_v3, %v444_v50  ;;  %v3566_v0 = vstv %s3553_s13  ;;  %v3567_v61 = vstv %s3548_s18  ;;  %s3326_s18 = smov 48  }
 0x115   : > { %3564 = vst [vmem:[#allocation128_spill] sm:$0xff] %v2527_v58  ;;  %v478_v52 = vmul.f32 %v3566_v0, %v2473_v22  ;;  %v445_v62 = vmul.f32 %v3567_v61, %v2482_v60  ;;  %v3568_v58 = vstv %s3555_s9  ;;  %v2547_v45 = vmul.f32 %v812_v20, %v2037_v1  ;;  %3573 = sst [smem:[#allocation73_spill]] %s2568_s23  ;;  %s3322_s9 = smov 32  }
 0x116   : > { %v506_v63 = vmul.f32 %v3568_v58, %v2479_v2  ;;  %v394_v26 = vadd.f32 %v2305_v56, %v388_v53  ;;  %v395_v33 = vadd.f32 %v2329_v42, %v389_v18  ;;  %v3569_v3 = vmov %v3568_v58  ;;  %v824_v53 = vpop.permute.xlu0 %823  ;;  %3576 = sst [smem:[#allocation74_spill]] %s2595_s7 }
 0x117   : > { %v507_v35 = vmul.f32 %v3569_v3, %v2482_v60  ;;  %v2555_v0 = vmul.f32 %v811_v36, %v2045_v5  ;;  %v456_v61 = vadd.f32 %v2334_v12, %v450_v55  ;;  %v451_v58 = vadd.f32 %v2275_v54, %v445_v62  ;;  %v826_v36 = vpop.permute.xlu1 %825 }
 0x118   : > { %v3571_v1 = vstv %s3553_s13  ;;  %v819_v56 = vsel %vm271_vm1, %v816_v51, %v818_v38  ;;  %v820_v18 = vsel %vm271_vm1, %v818_v38, %v816_v51  ;;  %v400_v42 = vadd.f32 %v2059_v13, %v394_v26  ;;  %s3583_s13 = sld [smem:[#allocation54_spill]] }
 0x119   : > { %v479_v28 = vmul.f32 %v3571_v1, %v2476_v59  ;;  %v401_v5 = vadd.f32 %v2062_v14, %v395_v33  ;;  %v462_v12 = vadd.f32 %v2065_v15, %v456_v61  ;;  %v457_v54 = vadd.f32 %v2345_v39, %v451_v58 }
 0x11a   : > { %v512_v20 = vadd.f32 %v2280_v19, %v506_v63  ;;  %v513_v50 = vadd.f32 %v2285_v23, %v507_v35  ;;  %v406_v55 = vadd.f32 %v2375_v24, %v400_v42  ;;  %v3574_v13 = vstv %s3570_s19  ;;  %v834_v3 = vpop.permute.xlu0 %833  ;;  %s3590_s19 = sld [smem:[#allocation55_spill]] }
 0x11b   : > { %v407_v62 = vadd.f32 %v2399_v11, %v401_v5  ;;  %v540_v38 = vmul.f32 %v3574_v13, %v2473_v22  ;;  %v3575_v14 = vstv %s3572_s1  ;;  %v2583_v15 = vmul.f32 %v820_v18, %v1974_v41  ;;  %s3594_s1 = sld [smem:[#allocation56_spill]] }
 0x11c   : > { %v623_v51 = vmul.f32 %v3575_v14, %v2479_v2  ;;  %v2586_v39 = vmul.f32 %v819_v56, %v1979_v43  ;;  %v468_v19 = vadd.f32 %v2404_v9, %v462_v12  ;;  %v463_v23 = vadd.f32 %v2071_v17, %v457_v54  ;;  %v836_v17 = vpop.permute.xlu1 %835 }
 0x11d   : > { %v827_v11 = vsel %vm291_vm2, %v824_v53, %v826_v36  ;;  %v828_v24 = vsel %vm291_vm2, %v826_v36, %v824_v53  ;;  %v412_v63 = vadd.f32 %v2445_v37, %v406_v55  ;;  %v413_v26 = vadd.f32 %v411_v30, %v407_v62  ;;  %v3585_v62 = vld [vmem:[#allocation126_spill] sm:$0xff] }
 0x11e   : > { %v474_v41 = vadd.f32 %v472_v7, %v468_v19  ;;  %v469_v43 = vadd.f32 %v2412_v46, %v463_v23  ;;  %v518_v33 = vadd.f32 %v2350_v34, %v512_v20  ;;  %v519_v9 = vadd.f32 %v2355_v8, %v513_v50  ;;  %v842_v54 = vpop.permute.xlu0 %841  ;;  %v3588_v19 = vld [vmem:[#allocation107_spill] sm:$0xff] }
 0x11f   : > { %v418_v35 = vadd.f32 %v416_v57, %v412_v63  ;;  %v419_v61 = vadd.f32 %v417_v10, %v413_v26  ;;  %v3578_v58 = vmov %v3574_v13  ;;  %v629_v37 = vadd.f32 %v2290_v27, %v623_v51  ;;  %v3586_v13 = vld [vmem:[#allocation120_spill] sm:$0xff] }
 0x120   : > { %v541_v1 = vmul.f32 %v3578_v58, %v2476_v59  ;;  %v2605_v30 = vmul.f32 %v828_v24, %v1982_v44  ;;  %v2608_v46 = vmul.f32 %v827_v11, %v1993_v47  ;;  %v837_v34 = vsel %vm324_vm3, %v834_v3, %v836_v17  ;;  %v844_v12 = vpop.permute.xlu1 %843  ;;  %v3589_v11 = vld [vmem:[#allocation76_spill] sm:$0xff]  ;;  %v3595_v58 = vld [vmem:[#allocation127_spill] sm:$0xff] }
 0x121   : > { %v475_v8 = vadd.f32 %v2493_v32, %v469_v43  ;;  %v838_v57 = vsel %vm324_vm3, %v836_v17, %v834_v3  ;;  %420 = vrot.lane.b32.xlu0 %v418_v35, %s3326_s18  ;;  %422 = vrot.lane.b32.xlu1 %v419_v61, %s3326_s18  ;;  %v524_v44 = vadd.f32 %v2079_v21, %v518_v33  ;;  %v3580_v27 = vstv %s3577_s5  ;;  %s3324_s5 = smov 16   ;;  %s1670_s18 = smov 112  }
 0x122   : > { %v657_v47 = vmul.f32 %v3580_v27, %v2473_v22  ;;  %v1156_v10 = vstv %s2568_s23  ;;  %v480_v7 = vadd.f32 %v478_v52, %v474_v41  ;;  %v525_v56 = vadd.f32 %v2087_v25, %v519_v9  ;;  %v850_v26 = vpop.permute.xlu0 %849  ;;  %s3641_s23 = sld [smem:[#allocation70_spill]] }
 0x123   : > { %v635_v32 = vadd.f32 %v2360_v4, %v629_v37  ;;  %v3581_v18 = vmov %v3575_v14  ;;  %v2628_v5 = vmul.f32 %v837_v34, %v1996_v48  ;;  %v481_v21 = vadd.f32 %v479_v28, %v475_v8  ;;  %v3587_v14 = vld [vmem:[#allocation106_spill] sm:$0xff]  ;;  %v3596_v34 = vld [vmem:[#allocation77_spill] sm:$0xff] }
 0x124   : > { %v624_v42 = vmul.f32 %v3581_v18, %v2482_v60  ;;  %v530_v20 = vadd.f32 %v2417_v31, %v524_v44  ;;  %v3582_v50 = vstv %s3579_s22  ;;  %v2635_v25 = vmul.f32 %v838_v57, %v1999_v49  ;;  %v852_v63 = vpop.permute.xlu1 %851  ;;  %v3598_v44 = vld [vmem:[#allocation114_spill] sm:$0xff]  ;;  %s3604_s22 = sld [smem:[#allocation61_spill]] }
 0x125   : > { %v685_v52 = vmul.f32 %v3582_v50, %v2479_v2  ;;  %v845_v4 = vsel %vm344_vm4, %v842_v54, %v844_v12  ;;  %v531_v36 = vadd.f32 %v2422_v16, %v525_v56  ;;  %v641_v48 = vadd.f32 %v2095_v29, %v635_v32  ;;  %482 = vrot.lane.b32.xlu0 %v480_v7, %s3322_s9  ;;  %v3600_v32 = vld [vmem:[#allocation78_spill] sm:$0xff] }
 0x126   : > { %v846_v53 = vsel %vm344_vm4, %v844_v12, %v842_v54  ;;  %484 = vrot.lane.b32.xlu1 %v481_v21, %s3322_s9  ;;  %v536_v49 = vadd.f32 %v2498_v6, %v530_v20  ;;  %v3584_v31 = vmov %v3580_v27  ;;  %v1162_v55 = vstv %s2595_s7  ;;  %v3591_v6 = vld [vmem:[#allocation118_spill] sm:$0xff]  ;;  %v3602_v12 = vld [vmem:[#allocation119_spill] sm:$0xff]  ;;  %s3606_s9 = sld [smem:[#allocation63_spill]] }
 0x127   : > { %v658_v28 = vmul.f32 %v3584_v31, %v2476_v59  ;;  %v537_v16 = vadd.f32 %v3585_v62, %v531_v36  ;;  %v647_v29 = vadd.f32 %v3586_v13, %v641_v48  ;;  %v630_v51 = vadd.f32 %v3587_v14, %v624_v42  ;;  %v3608_v48 = vld [vmem:[#allocation84_spill] sm:$0xff]  ;;  %v3610_v62 = vld [vmem:[#allocation115_spill] sm:$0xff]  ;;  %v3613_v14 = vld [vmem:[#allocation109_spill] sm:$0xff]  ;;  %s3639_s7 = sld [smem:[#allocation69_spill]] }
 0x128   : > { %v691_v23 = vadd.f32 %v3588_v19, %v685_v52  ;;  %v2655_v24 = vmul.f32 %v845_v4, %v3589_v11  ;;  %v542_v41 = vadd.f32 %v540_v38, %v536_v49  ;;  %v3592_v43 = vstv %s3583_s13  ;;  %v3597_v38 = vld [vmem:[#allocation113_spill] sm:$0xff]  ;;  %s3612_s13 = sld [smem:[#allocation62_spill]] }
 0x129   : > { %v713_v33 = vmul.f32 %v3592_v43, %v3591_v6  ;;  %v3593_v9 = vmov %v3582_v50  ;;  %v853_v3 = vsel %vm364_vm5, %v850_v26, %v852_v63  ;;  %v854_v35 = vsel %vm364_vm5, %v852_v63, %v850_v26  ;;  %v3607_v52 = vld [vmem:[#allocation79_spill] sm:$0xff]  ;;  %v3616_v63 = vld [vmem:[#allocation122_spill] sm:$0xff] }
 0x12a   : > { %v686_v17 = vmul.f32 %v3593_v9, %v2482_v60  ;;  %v543_v61 = vadd.f32 %v541_v1, %v537_v16  ;;  %v653_v37 = vadd.f32 %v3595_v58, %v647_v29  ;;  %v2669_v8 = vmul.f32 %v846_v53, %v3596_v34  ;;  %544 = vrot.lane.b32.xlu0 %v542_v41, %s3324_s5  ;;  %v3601_v1 = vld [vmem:[#allocation108_spill] sm:$0xff]  ;;  %v3609_v49 = vld [vmem:[#allocation85_spill] sm:$0xff] }
 0x12b   : > { %v636_v57 = vadd.f32 %v3597_v38, %v630_v51  ;;  %v697_v27 = vadd.f32 %v3598_v44, %v691_v23  ;;  %v3599_v7 = vstv %s3590_s19  ;;  %v2678_v18 = vmul.f32 %v853_v3, %v3600_v32  ;;  %v3619_v3 = vld [vmem:[#allocation88_spill] sm:$0xff]  ;;  %s3620_s19 = sld [smem:[#allocation66_spill]] }
 0x12c   : > { %v719_v56 = vmul.f32 %v3599_v7, %v2473_v22  ;;  %546 = vrot.lane.b32.xlu1 %v543_v61, %s3324_s5  ;;  %v692_v42 = vadd.f32 %v3601_v1, %v686_v17  ;;  %v3603_v54 = vmov %v3592_v43  ;;  %v3605_v20 = vstv %s3594_s1  ;;  %s2693_s5 = sld [smem:[#allocation3 + $0x5f]]  ;;  %v3621_v61 = vld [vmem:[#allocation116_spill] sm:$0xff] }
 0x12d   : > { %v714_v21 = vmul.f32 %v3603_v54, %v3602_v12  ;;  %v747_v50 = vmul.f32 %v3605_v20, %v2479_v2  ;;  %v2689_v4 = vmul.f32 %v854_v35, %v3607_v52  ;;  %v659_v36 = vadd.f32 %v657_v47, %v653_v37  ;;  %v3615_v47 = vld [vmem:[#allocation121_spill] sm:$0xff]  ;;  %v3622_v37 = vld [vmem:[#allocation110_spill] sm:$0xff]  ;;  %v3624_v44 = vld [vmem:[#allocation128_spill] sm:$0xff]  ;;  %s3634_s1 = sld [smem:[#allocation68_spill]] }
 0x12e   : > { %v642_v53 = vadd.f32 %v3608_v48, %v636_v57  ;;  %v703_v31 = vadd.f32 %v3609_v49, %v697_v27  ;;  %v698_v16 = vadd.f32 %v3610_v62, %v692_v42  ;;  %v3611_v13 = vmov %v3599_v7  ;;  %v3628_v52 = vld [vmem:[#allocation89_spill] sm:$0xff] }
 0x12f   : > { %v720_v29 = vmul.f32 %v3611_v13, %v2476_v59  ;;  %v753_v51 = vadd.f32 %v3613_v14, %v747_v50  ;;  %v3614_v19 = vmov %v3605_v20  ;;  %661 = vrot.lane.b32.xlu0 %v659_v36, %s1670_s18  ;;  %v3617_v41 = vstv %s3604_s22  ;;  %v3627_v20 = vld [vmem:[#allocation123_spill] sm:$0xff]  ;;  %v3629_v48 = vld [vmem:[#allocation117_spill] sm:$0xff]  ;;  %s3636_s22 = sld [smem:[#allocation65_spill]] }
 0x130   : > { %v748_v23 = vmul.f32 %v3614_v19, %v2482_v60  ;;  %v648_v11 = vadd.f32 %v3615_v47, %v642_v53  ;;  %v709_v26 = vadd.f32 %v3616_v63, %v703_v31  ;;  %v775_v43 = vmul.f32 %v3617_v41, %v3591_v6  ;;  %v3632_v19 = vld [vmem:[#allocation124_spill] sm:$0xff]  ;;  %v3633_v47 = vld [vmem:[#allocation90_spill] sm:$0xff] }
 0x131   : > { %v3618_v9 = vstv %s3606_s9  ;;  %v704_v35 = vadd.f32 %v3619_v3, %v698_v16  ;;  %v759_v58 = vadd.f32 %v3621_v61, %v753_v51  ;;  %v3623_v38 = vstv %s1943_s16  ;;  %s1672_s16 = smov 80   ;;  %s3008_s9 = sld [smem:[#allocation3 + $0x1a]] }
 0x132   : > { %v859_v17 = vmul.f32 %v3618_v9, %v2547_v45  ;;  %v754_v34 = vadd.f32 %v3622_v37, %v748_v23  ;;  %v863_v57 = vmul.f32 %v3623_v38, %v2583_v15  ;;  %v654_v27 = vadd.f32 %v3624_v44, %v648_v11 }
 0x133   : > { %v715_v7 = vadd.f32 %v713_v33, %v709_v26  ;;  %v3625_v32 = vstv %s3612_s13  ;;  %v3626_v42 = vstv %s3448_s14  ;;  %v710_v50 = vadd.f32 %v3627_v20, %v704_v35  ;;  %v3640_v35 = vld [vmem:[#allocation125_spill] sm:$0xff]  ;;  %s2909_s14 = sld [smem:[#allocation3 + $0x61]] }
 0x134   : > { %v781_v1 = vmul.f32 %v3625_v32, %v2473_v22  ;;  %v869_v54 = vmul.f32 %v3626_v42, %v2605_v30  ;;  %v765_v36 = vadd.f32 %v3628_v52, %v759_v58  ;;  %v760_v53 = vadd.f32 %v3629_v48, %v754_v34  ;;  %v3642_v58 = vld [vmem:[#allocation91_spill] sm:$0xff]  ;;  %s3020_s13 = sld [smem:[#allocation3 + $0x62]] }
 0x135   : > { %v865_v49 = vadd.f32 %v863_v57, %v859_v17  ;;  %v660_v31 = vadd.f32 %v658_v28, %v654_v27  ;;  %v721_v62 = vadd.f32 %v719_v56, %v715_v7  ;;  %v3630_v33 = vmov %v3617_v41 }
 0x136   : > { %v776_v16 = vmul.f32 %v3630_v33, %v3602_v12  ;;  %v3631_v13 = vstv %s3620_s19  ;;  %v716_v51 = vadd.f32 %v714_v21, %v710_v50  ;;  %v771_v23 = vadd.f32 %v3632_v19, %v765_v36  ;;  %v3652_v19 = vld [vmem:[#allocation92_spill] sm:$0xff]  ;;  %s3732_s19 = sld [smem:[#allocation18_spill]] }
 0x137   : > { %v881_v14 = vmul.f32 %v3631_v13, %v2628_v5  ;;  %v766_v11 = vadd.f32 %v3633_v47, %v760_v53  ;;  %v871_v63 = vadd.f32 %v869_v54, %v865_v49  ;;  %663 = vrot.lane.b32.xlu1 %v660_v31, %s1670_s18  ;;  %723 = vrot.lane.b32.xlu0 %v721_v62, %s1671_s3  ;;  %v1174_v17 = vstv %s2693_s5  ;;  %s3012_s5 = sld [smem:[#allocation3 + $0x1b]] }
 0x138   : > { %v3635_v28 = vmov %v3618_v9  ;;  %v3637_v26 = vmov %v3623_v38  ;;  %v3638_v21 = vmov %v3626_v42  ;;  %v777_v3 = vadd.f32 %v775_v43, %v771_v23 }
 0x139   : > { %v860_v56 = vmul.f32 %v3635_v28, %v2555_v0  ;;  %v864_v41 = vmul.f32 %v3637_v26, %v2586_v39  ;;  %v870_v9 = vmul.f32 %v3638_v21, %v2608_v46  ;;  %v772_v61 = vadd.f32 %v3640_v35, %v766_v11 }
 0x13a   : > { %v877_v37 = vadd.f32 %v3642_v58, %v871_v63  ;;  %v3643_v34 = vstv %s3453_s2  ;;  %v722_v57 = vadd.f32 %v720_v29, %v716_v51  ;;  %v3644_v44 = vmov %v3625_v32  ;;  %s3659_s2 = smov 48  }
 0x13b   : > { %v887_v38 = vmul.f32 %v3643_v34, %v2655_v24  ;;  %v782_v27 = vmul.f32 %v3644_v44, %v2476_v59  ;;  %v3645_v7 = vstv %s3634_s1  ;;  %v866_v42 = vadd.f32 %v864_v41, %v860_v56  ;;  %s3733_s1 = sld [smem:[#allocation23_spill]] }
 0x13c   : > { %v893_v32 = vmul.f32 %v3645_v7, %v2678_v18  ;;  %v783_v54 = vadd.f32 %v781_v1, %v777_v3  ;;  %v778_v43 = vadd.f32 %v776_v16, %v772_v61  ;;  %v883_v20 = vadd.f32 %v881_v14, %v877_v37  ;;  %725 = vrot.lane.b32.xlu1 %v722_v57, %s1671_s3 }
 0x13d   : > { %v3646_v50 = vstv %s3636_s22  ;;  %v872_v29 = vadd.f32 %v870_v9, %v866_v42  ;;  %v3647_v36 = vmov %v3631_v13  ;;  %v3648_v53 = vstv %s3639_s7  ;;  %s1357_s7 = sld [smem:[#allocation3 + $0x18]] }
 0x13e   : > { %v909_v52 = vmul.f32 %v3646_v50, %v2547_v45  ;;  %v882_v48 = vmul.f32 %v3647_v36, %v2635_v25  ;;  %v913_v49 = vmul.f32 %v3648_v53, %v2583_v15  ;;  %v3649_v1 = vstv %s3641_s23  ;;  %785 = vrot.lane.b32.xlu0 %v783_v54, %s1672_s16  ;;  %s1356_s23 = sld [smem:[#allocation3 + $0x17]] }
 0x13f   : > { %v919_v31 = vmul.f32 %v3649_v1, %v2605_v30  ;;  %v784_v62 = vadd.f32 %v782_v27, %v778_v43  ;;  %v889_v33 = vadd.f32 %v887_v38, %v883_v20  ;;  %v3650_v16 = vmov %v3643_v34  ;;  %s3734_s22 = sld [smem:[#allocation24_spill]] }
 0x140   : > { %v888_v13 = vmul.f32 %v3650_v16, %v2669_v8  ;;  %v3651_v14 = vmov %v3645_v7  ;;  %v878_v23 = vadd.f32 %v3652_v19, %v872_v29  ;;  %v915_v47 = vadd.f32 %v913_v49, %v909_v52  ;;  %v3664_v52 = vld [vmem:[#allocation93_spill] sm:$0xff] }
 0x141   : > { %v894_v51 = vmul.f32 %v3651_v14, %v2689_v4  ;;  %v3653_v11 = vmov %v3646_v50  ;;  %v3654_v28 = vmov %v3648_v53  ;;  %v895_v26 = vadd.f32 %v893_v32, %v889_v33  ;;  %787 = vrot.lane.b32.xlu1 %v784_v62, %s1672_s16 }
 0x142   : > { %v910_v63 = vmul.f32 %v3653_v11, %v2555_v0  ;;  %v914_v56 = vmul.f32 %v3654_v28, %v2586_v39  ;;  %v3655_v41 = vstv %s1967_s21  ;;  %v3656_v9 = vstv %s3458_s0  ;;  %s2829_s0 = sld [smem:[#allocation3 + $0x60]]  ;;  %s3683_s21 = smov 32  }
 0x143   : > { %v931_v21 = vmul.f32 %v3655_v41, %v2628_v5  ;;  %v937_v3 = vmul.f32 %v3656_v9, %v2655_v24  ;;  %v3657_v35 = vmov %v3649_v1  ;;  %v884_v58 = vadd.f32 %v882_v48, %v878_v23  ;;  %897 = vrot.lane.b32.xlu0 %v895_v26, %s3659_s2  ;;  %v3669_v23 = vld [vmem:[#allocation94_spill] sm:$0xff] }
 0x144   : > { %v920_v61 = vmul.f32 %v3657_v35, %v2608_v46  ;;  %v921_v37 = vadd.f32 %v919_v31, %v915_v47  ;;  %v3658_v34 = vstv %s3459_s26  ;;  %v916_v57 = vadd.f32 %v914_v56, %v910_v63  ;;  %s1407_s26 = sld [smem:[#allocation3 + $0x4a]] }
 0x145   : > { %v943_v38 = vmul.f32 %v3658_v34, %v2678_v18  ;;  %v3660_v44 = vmov %v3655_v41  ;;  %v3661_v7 = vstv %s3461_s30  ;;  %v3662_v42 = vstv %s2002_s17  ;;  %s3681_s17 = sld [smem:[#allocation60_spill]] }
 0x146   : > { %v932_v27 = vmul.f32 %v3660_v44, %v2635_v25  ;;  %v959_v32 = vmul.f32 %v3661_v7, %v2547_v45  ;;  %v963_v54 = vmul.f32 %v3662_v42, %v2583_v15  ;;  %v3663_v43 = vstv %s2010_s8  ;;  %s3686_s8 = sld [smem:[#allocation52_spill]] }
 0x147   : > { %v969_v20 = vmul.f32 %v3663_v43, %v2605_v30  ;;  %v890_v50 = vadd.f32 %v888_v13, %v884_v58  ;;  %v927_v29 = vadd.f32 %v3664_v52, %v921_v37  ;;  %v922_v36 = vadd.f32 %v920_v61, %v916_v57  ;;  %v3675_v57 = vld [vmem:[#allocation95_spill] sm:$0xff] }
 0x148   : > { %v3665_v48 = vmov %v3656_v9  ;;  %v3666_v49 = vmov %v3658_v34  ;;  %v965_v31 = vadd.f32 %v963_v54, %v959_v32  ;;  %v3667_v62 = vmov %v3661_v7 }
 0x149   : > { %v938_v53 = vmul.f32 %v3665_v48, %v2669_v8  ;;  %v944_v1 = vmul.f32 %v3666_v49, %v2689_v4  ;;  %v960_v33 = vmul.f32 %v3667_v62, %v2555_v0  ;;  %v3668_v16 = vmov %v3662_v42  ;;  %v3680_v48 = vld [vmem:[#allocation96_spill] sm:$0xff] }
 0x14a   : > { %v964_v14 = vmul.f32 %v3668_v16, %v2586_v39  ;;  %v896_v19 = vadd.f32 %v894_v51, %v890_v50  ;;  %v933_v13 = vadd.f32 %v931_v21, %v927_v29  ;;  %v928_v47 = vadd.f32 %v3669_v23, %v922_v36 }
 0x14b   : > { %v3670_v11 = vmov %v3663_v43  ;;  %v971_v28 = vadd.f32 %v969_v20, %v965_v31  ;;  %v3671_v56 = vstv %s2034_s6  ;;  %v3672_v41 = vstv %s2042_s4  ;;  %s3705_s6 = sld [smem:[#allocation67_spill]]  ;;  %s1228_s4 = scalar_lea.sflag [#allocation6], %s3733_s1 }
 0x14c   : > { %v970_v63 = vmul.f32 %v3670_v11, %v2608_v46  ;;  %v981_v26 = vmul.f32 %v3671_v56, %v2628_v5  ;;  %v987_v9 = vmul.f32 %v3672_v41, %v2655_v24  ;;  %v966_v51 = vadd.f32 %v964_v14, %v960_v33  ;;  %899 = vrot.lane.b32.xlu1 %v896_v19, %s3659_s2  ;;  %s1439_s2 = sshll.u32 %s3732_s19, 7 }
 0x14d   : > { %v939_v21 = vadd.f32 %v937_v3, %v933_v13  ;;  %v934_v35 = vadd.f32 %v932_v27, %v928_v47  ;;  %v3673_v61 = vmov %v3671_v56  ;;  %v3674_v37 = vstv %s3467_s27  ;;  %s3697_s27 = sld [smem:[#allocation64_spill]] }
 0x14e   : > { %v982_v58 = vmul.f32 %v3673_v61, %v2635_v25  ;;  %v1053_v34 = vmul.f32 %v3674_v37, %v2547_v45  ;;  %v977_v44 = vadd.f32 %v3675_v57, %v971_v28  ;;  %v972_v7 = vadd.f32 %v970_v63, %v966_v51 }
 0x14f   : > { %v3676_v32 = vstv %s3468_s12  ;;  %v3677_v54 = vstv %s3469_s28  ;;  %v945_v3 = vadd.f32 %v943_v38, %v939_v21  ;;  %v940_v27 = vadd.f32 %v938_v53, %v934_v35  ;;  %s3696_s12 = smov 16   ;;  %s1355_s28 = sld [smem:[#allocation3 + $0x16]] }
 0x150   : > { %v1057_v42 = vmul.f32 %v3676_v32, %v2583_v15  ;;  %v1063_v43 = vmul.f32 %v3677_v54, %v2605_v30  ;;  %v3678_v20 = vstv %s3464_s29  ;;  %v3679_v52 = vmov %v3672_v41  ;;  %s1408_s29 = sld [smem:[#allocation3 + $0x4b]] }
 0x151   : > { %v993_v50 = vmul.f32 %v3678_v20, %v2678_v18  ;;  %v988_v29 = vmul.f32 %v3679_v52, %v2669_v8  ;;  %v983_v36 = vadd.f32 %v981_v26, %v977_v44  ;;  %v978_v49 = vadd.f32 %v3680_v48, %v972_v7  ;;  %947 = vrot.lane.b32.xlu0 %v945_v3, %s3683_s21 }
 0x152   : > { %v3682_v31 = vmov %v3678_v20  ;;  %v1059_v33 = vadd.f32 %v1057_v42, %v1053_v34  ;;  %v946_v38 = vadd.f32 %v944_v1, %v940_v27  ;;  %v3684_v53 = vmov %v3674_v37 }
 0x153   : > { %v994_v62 = vmul.f32 %v3682_v31, %v2689_v4  ;;  %v1054_v16 = vmul.f32 %v3684_v53, %v2555_v0  ;;  %v3685_v14 = vmov %v3676_v32  ;;  %v3687_v13 = vmov %v3677_v54 }
 0x154   : > { %v1058_v19 = vmul.f32 %v3685_v14, %v2586_v39  ;;  %v1064_v23 = vmul.f32 %v3687_v13, %v2608_v46  ;;  %v989_v47 = vadd.f32 %v987_v9, %v983_v36  ;;  %v984_v11 = vadd.f32 %v982_v58, %v978_v49  ;;  %949 = vrot.lane.b32.xlu1 %v946_v38, %s3683_s21  ;;  %v3691_v58 = vld [vmem:[#allocation97_spill] sm:$0xff]  ;;  %v3699_v36 = vld [vmem:[#allocation98_spill] sm:$0xff] }
 0x155   : > { %v1065_v63 = vadd.f32 %v1063_v43, %v1059_v33  ;;  %v3688_v28 = vstv %s2092_s25  ;;  %v3689_v1 = vstv %s2100_s10  ;;  %v3690_v51 = vstv %s3681_s17  ;;  %s3712_s10 = sld [smem:[#allocation57_spill]] }
 0x156   : > { %v1075_v56 = vmul.f32 %v3688_v28, %v2628_v5  ;;  %v1081_v26 = vmul.f32 %v3689_v1, %v2655_v24  ;;  %v1060_v41 = vadd.f32 %v1058_v19, %v1054_v16  ;;  %v1103_v21 = vmul.f32 %v3690_v51, %v2547_v45  ;;  %s1406_s25 = sld [smem:[#allocation3 + $0x49]] }
 0x157   : > { %v1180_v35 = vstv %s2829_s0  ;;  %v995_v9 = vadd.f32 %v993_v50, %v989_v47  ;;  %v990_v61 = vadd.f32 %v988_v29, %v984_v11  ;;  %v1071_v37 = vadd.f32 %v3691_v58, %v1065_v63  ;;  %s3736_s0 = sshll.u32 %s3733_s1, 3 }
 0x158   : > { %v3692_v34 = vstv %s2128_s24  ;;  %v3693_v44 = vstv %s3686_s8  ;;  %v1066_v32 = vadd.f32 %v1064_v23, %v1060_v41  ;;  %v3694_v42 = vmov %v3688_v28  ;;  %s1405_s24 = sld [smem:[#allocation3 + $0x48]]  ;;  %s179_s17 = scalar_lea.vmem [#allocation9], %s3736_s0 }
 0x159   : > { %v1107_v57 = vmul.f32 %v3692_v34, %v2583_v15  ;;  %v1087_v7 = vmul.f32 %v3693_v44, %v2678_v18  ;;  %v1076_v54 = vmul.f32 %v3694_v42, %v2635_v25  ;;  %v3695_v43 = vstv %s2137_s20  ;;  %997 = vrot.lane.b32.xlu0 %v995_v9, %s3696_s12  ;;  %s2968_s20 = sld [smem:[#allocation3 + $0x47]]  ;;  %s1242_s21 = sshll.u32 %s179_s17, 4  ;;  %s1243_s21 = int_to_ptr.vmem [resolvable:$true] %s1242_s21 }
 0x15a   : > { %v1113_v3 = vmul.f32 %v3695_v43, %v2605_v30  ;;  %v996_v27 = vadd.f32 %v994_v62, %v990_v61  ;;  %v1077_v20 = vadd.f32 %v1075_v56, %v1071_v37  ;;  %v3698_v50 = vmov %v3689_v1 }
 0x15b   : > { %v1082_v52 = vmul.f32 %v3698_v50, %v2669_v8  ;;  %v1109_v29 = vadd.f32 %v1107_v57, %v1103_v21  ;;  %v1072_v48 = vadd.f32 %v3699_v36, %v1066_v32  ;;  %v3700_v49 = vmov %v3690_v51  ;;  %v3716_v50 = vld [vmem:[#allocation102_spill] sm:$0xff] }
 0x15c   : > { %v1104_v31 = vmul.f32 %v3700_v49, %v2555_v0  ;;  %v3702_v33 = vmov %v3692_v34  ;;  %v3704_v53 = vmov %v3695_v43  ;;  %999 = vrot.lane.b32.xlu1 %v996_v27, %s3696_s12  ;;  %v1083_v62 = vadd.f32 %v1081_v26, %v1077_v20  ;;  %v3710_v26 = vld [vmem:[#allocation101_spill] sm:$0xff] }
 0x15d   : > { %v1108_v38 = vmul.f32 %v3702_v33, %v2586_v39  ;;  %v1114_v16 = vmul.f32 %v3704_v53, %v2608_v46  ;;  %v3706_v14 = vmov %v3693_v44  ;;  %v1115_v13 = vadd.f32 %v1113_v3, %v1109_v29  ;;  %v3717_v33 = vld [vmem:[#allocation87_spill] sm:$0xff] }
 0x15e   : > { %v1088_v19 = vmul.f32 %v3706_v14, %v2689_v4  ;;  %v3707_v23 = vstv %s2153_s15  ;;  %v1078_v11 = vadd.f32 %v1076_v54, %v1072_v48  ;;  %v3708_v63 = vstv %s3697_s27  ;;  %s1409_s15 = sld [smem:[#allocation3 + $0x4c]] }
 0x15f   : > { %v1125_v47 = vmul.f32 %v3707_v23, %v2628_v5  ;;  %v1131_v28 = vmul.f32 %v3708_v63, %v2655_v24  ;;  %v1110_v56 = vadd.f32 %v1108_v38, %v1104_v31  ;;  %v3709_v1 = vstv %s2188_s11  ;;  %s2962_s11 = sld [smem:[#allocation3 + $0x46]] }
 0x160   : > { %v1153_v41 = vmul.f32 %v3709_v1, %v2547_v45  ;;  %v1089_v51 = vadd.f32 %v1087_v7, %v1083_v62  ;;  %v1121_v21 = vadd.f32 %v3710_v26, %v1115_v13  ;;  %v1157_v9 = vmul.f32 %v1156_v10, %v2583_v15  ;;  %v3720_v13 = vld [vmem:[#allocation103_spill] sm:$0xff]  ;;  %s3737_s27 = sld [smem:[#allocation131_spill]] }
 0x161   : > { %v1163_v61 = vmul.f32 %v1162_v55, %v2605_v30  ;;  %v1084_v58 = vadd.f32 %v1082_v52, %v1078_v11  ;;  %v3711_v37 = vstv %s3705_s6  ;;  %v1116_v57 = vadd.f32 %v1114_v16, %v1110_v56  ;;  %s1584_s6 = scalar_lea.vmem %s1243_s21, 128 }
 0x162   : > { %v1137_v34 = vmul.f32 %v3711_v37, %v2678_v18  ;;  %v3713_v44 = vmov %v3707_v23  ;;  %1091 = vrot.lane.b32.xlu0 %v1089_v51, %s1670_s18  ;;  %v1127_v7 = vadd.f32 %v1125_v47, %v1121_v21  ;;  %v3714_v42 = vmov %v3708_v63  ;;  %p1585_p8 = scmp.ne.s32.totalorder %s1243_s21, %s1584_s6 }
 0x163   : > { %v1126_v32 = vmul.f32 %v3713_v44, %v2635_v25  ;;  %v1132_v54 = vmul.f32 %v3714_v42, %v2669_v8  ;;  %v1159_v43 = vadd.f32 %v1157_v9, %v1153_v41  ;;  %v3715_v3 = vmov %v3709_v1 }
 0x164   : > { %v1154_v27 = vmul.f32 %v3715_v3, %v2555_v0  ;;  %v1090_v20 = vadd.f32 %v1088_v19, %v1084_v58  ;;  %v1122_v52 = vadd.f32 %v3716_v50, %v1116_v57  ;;  %v1158_v29 = vmul.f32 %v1156_v10, %v2586_v39 }
 0x165   : > { %v1164_v36 = vmul.f32 %v1162_v55, %v2608_v46  ;;  %v1133_v48 = vadd.f32 %v1131_v28, %v1127_v7  ;;  %v1165_v49 = vadd.f32 %v1163_v61, %v1159_v43  ;;  %v1175_v31 = vmul.f32 %v1174_v17, %v2628_v5 }
 0x166   : > { %v3718_v38 = vstv %s3712_s10  ;;  %1093 = vrot.lane.b32.xlu1 %v1090_v20, %s1670_s18  ;;  %v1128_v16 = vadd.f32 %v1126_v32, %v1122_v52  ;;  %v3719_v62 = vmov %v3711_v37  ;;  %v1186_v19 = vstv %s2909_s14  ;;  %v3721_v52 = vld [vmem:[#allocation86_spill] sm:$0xff]  ;;  %s1358_s18 = sld [smem:[#allocation3 + $0x19]]  ;;  %s1240_s30 = scalar_lea.hbm %s3737_s27, %s1439_s2 }
 0x167   : > { %v1170_v53 = vmul.f32 %v3718_v38, %v3717_v33  ;;  %v1138_v14 = vmul.f32 %v3719_v62, %v2689_v4  ;;  %v1160_v10 = vadd.f32 %v1158_v29, %v1154_v27  ;;  %v1139_v55 = vadd.f32 %v1137_v34, %v1133_v48  ;;  %s1673_s14 = smov [#allocation9]  }
 0x168   : > { %v1171_v23 = vadd.f32 %v3720_v13, %v1165_v49  ;;  %v1181_v47 = vmul.f32 %v1180_v35, %v2655_v24  ;;  %v1134_v11 = vadd.f32 %v1132_v54, %v1128_v16  ;;  %v1176_v28 = vmul.f32 %v1174_v17, %v2635_v25  ;;  %s1588_s10 = sshll.u32 %s1673_s14, 4  ;;  %s1589_s10 = int_to_ptr.vmem [resolvable:$false] %s1588_s10 }
 0x169   : > { %v1166_v63 = vadd.f32 %v1164_v36, %v1160_v10  ;;  %1141 = vrot.lane.b32.xlu0 %v1139_v55, %s1671_s3  ;;  %v1187_v1 = vmul.f32 %v1186_v19, %v2678_v18  ;;  %v1182_v26 = vmul.f32 %v1180_v35, %v2669_v8  ;;  %v1188_v17 = vmul.f32 %v1186_v19, %v2689_v4  ;;  %p1591_p10 = scmp.lt.s32.totalorder %s1243_s21, %s1589_s10 }
 0x16a   : > { %v1177_v56 = vadd.f32 %v1175_v31, %v1171_v23  ;;  %v1140_v41 = vadd.f32 %v1138_v14, %v1134_v11  ;;  %v1008_v37 = vstv %s2962_s11  ;;  %v1012_v57 = vstv %s2968_s20  ;;  %s1590_s11 = scalar_lea.vmem %s1589_s10, 256 }
 0x16b   : > { %v1172_v51 = vadd.f32 %v1170_v53, %v1166_v63  ;;  %v1018_v44 = vstv %s1405_s24  ;;  %v1009_v35 = vmul.f32 %v1008_v37, %v2547_v45  ;;  %v1010_v32 = vmul.f32 %v1008_v37, %v2555_v0  ;;  %p1592_p2 = scmp.lt.s32.totalorder %s1590_s11, %s1584_s6 }
 0x16c   : > { %v1183_v21 = vadd.f32 %v1181_v47, %v1177_v56  ;;  %1143 = vrot.lane.b32.xlu1 %v1140_v41, %s1671_s3  ;;  %v1024_v7 = vstv %s1406_s25  ;;  %v1013_v42 = vmul.f32 %v1012_v57, %v2583_v15  ;;  %v1014_v54 = vmul.f32 %v1012_v57, %v2586_v39  ;;  %s1354_s3 = sld [smem:[#allocation3 + $0x15]] }
 0x16d   : > { %v1178_v9 = vadd.f32 %v1176_v28, %v1172_v51  ;;  %v1019_v43 = vmul.f32 %v1018_v44, %v2605_v30  ;;  %v1020_v3 = vmul.f32 %v1018_v44, %v2608_v46  ;;  %v1030_v27 = vstv %s1407_s26  ;;  %v3722_v28 = vld [vmem:[#allocation99_spill] sm:$0xff]  ;;  %p1593_p13 = por %p1592_p2, %p1591_p10 }
 0x16e   : > { %v1189_v61 = vadd.f32 %v1187_v1, %v1183_v21  ;;  %v1015_v20 = vadd.f32 %v1013_v42, %v1009_v35  ;;  %v1016_v50 = vadd.f32 %v1014_v54, %v1010_v32  ;;  %v1025_v29 = vmul.f32 %v1024_v7, %v3721_v52  ;;  %v3723_v1 = vld [vmem:[#allocation100_spill] sm:$0xff]  ;;  %v3727_v44 = vld [vmem:[#allocation81_spill] sm:$0xff] }
 0x16f   : > { %v1184_v58 = vadd.f32 %v1182_v26, %v1178_v9  ;;  %v1026_v36 = vmul.f32 %v1024_v7, %v3717_v33  ;;  %v1036_v48 = vstv %s1408_s29  ;;  %v1031_v0 = vmul.f32 %v1030_v27, %v2628_v5  ;;  %v229_v42 = vld [vmem:[#allocation7 + $0x7] ss:$8 sm:$0x3]  ;;  %v3728_v52 = vld [vmem:[#allocation71_spill] sm:$0xff] }
 0x170   : > { %1191 = vrot.lane.b32.xlu0 %v1189_v61, %s1672_s16  ;;  %v1021_v45 = vadd.f32 %v1019_v43, %v1015_v20  ;;  %v1022_v49 = vadd.f32 %v1020_v3, %v1016_v50  ;;  %v1032_v15 = vmul.f32 %v1030_v27, %v2635_v25  ;;  %v1042_v31 = vstv %s1409_s15  ;;  %v231_v43 = vld [vmem:[#allocation7 + $0x10] ss:$8 sm:$0x3] }
 0x171   : > { %v1190_v34 = vadd.f32 %v1188_v17, %v1184_v58  ;;  %v1037_v30 = vmul.f32 %v1036_v48, %v2655_v24  ;;  %v1038_v46 = vmul.f32 %v1036_v48, %v2669_v8  ;;  %v1043_v62 = vmul.f32 %v1042_v31, %v2678_v18  ;;  %v3724_v17 = vld [vmem:[#allocation104_spill] sm:$0xff]  ;;  %v3725_v58 = vld [vmem:[#allocation105_spill] sm:$0xff] }
 0x172   : > { %v1027_v39 = vadd.f32 %v1025_v29, %v1021_v45  ;;  %v1028_v38 = vadd.f32 %v1026_v36, %v1022_v49  ;;  %v1044_v33 = vmul.f32 %v1042_v31, %v2689_v4  ;;  %v567_v8 = vstv %s1354_s3  ;;  %v3729_v36 = vld [vmem:[#allocation72_spill] sm:$0xff]  ;;  %v3730_v49 = vld [vmem:[#allocation111_spill] sm:$0xff] }
 0x173   : > { %1193 = vrot.lane.b32.xlu1 %v1190_v34, %s1672_s16  ;;  %v571_v47 = vstv %s1355_s28  ;;  %v568_v18 = vmul.f32 %v567_v8, %v2479_v2  ;;  %v569_v4 = vmul.f32 %v567_v8, %v2482_v60  ;;  %v577_v51 = vstv %s1356_s23  ;;  %v3726_v34 = vld [vmem:[#allocation80_spill] sm:$0xff]  ;;  %v233_v45 = vld [vmem:[#allocation7 + $0x11] ss:$8 sm:$0x3]  ;;  %s3735_s16 = sld [smem:[#allocation22_spill]] }
 0x174   : > { %v1033_v53 = vadd.f32 %v1031_v0, %v1027_v39  ;;  %v1034_v16 = vadd.f32 %v1032_v15, %v1028_v38  ;;  %v572_v56 = vmul.f32 %v571_v47, %v3722_v28  ;;  %v573_v41 = vmul.f32 %v571_v47, %v3723_v1  ;;  %v3731_v15 = vld [vmem:[#allocation112_spill] sm:$0xff] }
 0x175   : > { %v583_v9 = vstv %s1357_s7  ;;  %v578_v61 = vmul.f32 %v577_v51, %v3724_v17  ;;  %v579_v2 = vmul.f32 %v577_v51, %v3725_v58  ;;  %v589_v54 = vstv %s1358_s18  ;;  %v235_v51 = vld [vmem:[#allocation7 + $0x12] ss:$8 sm:$0x3] }
 0x176   : > { %v1039_v14 = vadd.f32 %v1037_v30, %v1033_v53  ;;  %v1040_v19 = vadd.f32 %v1038_v46, %v1034_v16  ;;  %v574_v26 = vadd.f32 %v572_v56, %v568_v18  ;;  %v575_v21 = vadd.f32 %v573_v41, %v569_v4 }
 0x177   : > { %v584_v57 = vmul.f32 %v583_v9, %v3726_v34  ;;  %v585_v35 = vmul.f32 %v583_v9, %v3727_v44  ;;  %v595_v50 = vstv %s3008_s9  ;;  %v3028_v29 = vrot.slane %v229_v42, %v3728_v52  ;;  %v239_v44 = vld [vmem:[#allocation7 + $0x14] ss:$8 sm:$0x3] }
 0x178   : > { %v2998_v10 = vadd.f32 %v1043_v62, %v1039_v14  ;;  %v3000_v5 = vadd.f32 %v1044_v33, %v1040_v19  ;;  %v580_v60 = vadd.f32 %v578_v61, %v574_v26  ;;  %v581_v37 = vadd.f32 %v579_v2, %v575_v21 }
 0x179   : > { %v3031_v48 = vrot.slane %v229_v42, %v3729_v36  ;;  %v590_v0 = vmul.f32 %v589_v54, %v3730_v49  ;;  %v591_v31 = vmul.f32 %v589_v54, %v3731_v15  ;;  %v3042_v46 = vrot.slane %v231_v43, %v3728_v52  ;;  %p3738_p3 = scmp.ne.s32.totalorder %s3735_s16, 0 }
 0x17a   : > { %v586_v3 = vadd.f32 %v584_v57, %v580_v60  ;;  %v587_v27 = vadd.f32 %v585_v35, %v581_v37  ;;  %v601_v53 = vstv %s3012_s5  ;;  %v3046_v16 = vrot.slane %v231_v43, %v3729_v36  ;;  %v237_v60 = vld [vmem:[#allocation7 + $0x13] ss:$8 sm:$0x3] }
 0x17b   : > { %v596_v4 = vmul.f32 %v595_v50, %v3591_v6  ;;  %v597_v28 = vmul.f32 %v595_v50, %v3602_v12  ;;  %v243_v56 = vstv %s3020_s13  ;;  %v602_v17 = vmul.f32 %v601_v53, %v2473_v22  ;;  %p1586_p11 = pnand %p1585_p8, %p3738_p3 }
 0x17c   : > { %v592_v62 = vadd.f32 %v590_v0, %v586_v3  ;;  %v593_v33 = vadd.f32 %v591_v31, %v587_v27  ;;  %v603_v6 = vmul.f32 %v601_v53, %v2476_v59  ;;  %v3078_v37 = vrot.slane %v235_v51, %v3729_v36  ;;  %v241_v3 = vld [vmem:[#allocation7 + $0x15] ss:$8 sm:$0x3] }
 0x17d   : > { %v3082_v35 = vrot.slane %v237_v60, %v3728_v52  ;;  %v3085_v43 = vrot.slane %v237_v60, %v3729_v36  ;;  %v734_v49 = vrot.slane %v239_v44, %v3728_v52  ;;  %v738_v31 = vrot.slane %v239_v44, %v3729_v36  ;;  %p1587_p7 = pneg %p1586_p11 }
 0x17e   : > { %v598_v26 = vadd.f32 %v596_v4, %v592_v62  ;;  %v599_v21 = vadd.f32 %v597_v28, %v593_v33  ;;  %v800_v53 = vrot.slane %v241_v3, %v3729_v36 }
 0x17f   : > { %p1594_p0 = pnand %p1593_p13, %p1587_p7 }
 0x180   : > { %v604_v57 = vadd.f32 %v602_v17, %v598_v26  ;;  %v605_v59 = vadd.f32 %v603_v6, %v599_v21 }
 0x182   : > { %v618_v15 = vmul.f32 %v3078_v37, %v605_v59 }
 0x193   : > { %v421_v25 = vpop.permute.xlu0 %420  ;;  %v423_v55 = vpop.permute.xlu1 %422 }
 0x194   : > { %v425_v38 = vsel %vm424_vm7, %v421_v25, %v423_v55  ;;  %v426_v30 = vsel %vm424_vm7, %v423_v55, %v421_v25  ;;  %v3054_v25 = vrot.slane %v233_v45, %v3728_v52  ;;  %v3057_v55 = vrot.slane %v233_v45, %v3729_v36 }
 0x195   : > { %v438_v47 = vmul.f32 %v3028_v29, %v426_v30  ;;  %v439_v18 = vmul.f32 %v3031_v48, %v425_v38 }
 0x197   : > { %v483_v13 = vpop.permute.xlu0 %482  ;;  %v440_v12 = vadd.f32 %v438_v47, %v243_v56  ;;  %v441_v61 = vadd.f32 %v439_v18, %v243_v56 }
 0x198   : > { %v485_v24 = vpop.permute.xlu1 %484 }
 0x199   : > { %v487_v19 = vsel %vm486_vm8, %v483_v13, %v485_v24  ;;  %v488_v8 = vsel %vm486_vm8, %v485_v24, %v483_v13 }
 0x19a   : > { %v500_v24 = vmul.f32 %v3042_v46, %v488_v8  ;;  %v501_v41 = vmul.f32 %v3046_v16, %v487_v19 }
 0x19c   : > { %v545_v23 = vpop.permute.xlu0 %544  ;;  %v502_v34 = vadd.f32 %v500_v24, %v440_v12  ;;  %v503_v22 = vadd.f32 %v501_v41, %v441_v61 }
 0x19e   : > { %v547_v11 = vpop.permute.xlu1 %546 }
 0x19f   : > { %v549_v1 = vsel %vm548_vm9, %v545_v23, %v547_v11  ;;  %v550_v13 = vsel %vm548_vm9, %v547_v11, %v545_v23  ;;  %v3075_v11 = vrot.slane %v235_v51, %v3728_v52 }
 0x1a0   : > { %v562_v58 = vmul.f32 %v3054_v25, %v550_v13  ;;  %v563_v2 = vmul.f32 %v3057_v55, %v549_v1 }
 0x1a1   : > { %v3004_v63 = vpop.permute.xlu0 %661  ;;  %v617_v0 = vmul.f32 %v3075_v11, %v604_v57 }
 0x1a2   : > { %v564_v42 = vadd.f32 %v562_v58, %v502_v34  ;;  %v565_v54 = vadd.f32 %v563_v2, %v503_v22 }
 0x1a4   : > { %v619_v62 = vadd.f32 %v617_v0, %v564_v42  ;;  %v620_v33 = vadd.f32 %v618_v15, %v565_v54 }
 0x1a9   : > { %v3016_v32 = vpop.permute.xlu1 %663  ;;  %v3018_v7 = vpop.permute.xlu0 %723 }
 0x1aa   : > { %v666_v50 = vsel %vm665_vm10, %v3004_v63, %v3016_v32  ;;  %v667_v45 = vsel %vm665_vm10, %v3016_v32, %v3004_v63  ;;  %v796_v32 = vrot.slane %v241_v3, %v3728_v52 }
 0x1ab   : > { %v679_v19 = vmul.f32 %v3082_v35, %v666_v50  ;;  %v680_v8 = vmul.f32 %v3085_v43, %v667_v45 }
 0x1ad   : > { %v681_v56 = vadd.f32 %v679_v19, %v619_v62  ;;  %v682_v1 = vadd.f32 %v680_v8, %v620_v33 }
 0x1ae   : > { %v3023_v20 = vpop.permute.xlu1 %725 }
 0x1af   : > { %v728_v30 = vsel %vm727_vm11, %v3018_v7, %v3023_v20  ;;  %v729_v63 = vsel %vm727_vm11, %v3023_v20, %v3018_v7 }
 0x1b0   : > { %v3035_v39 = vpop.permute.xlu0 %785  ;;  %v741_v4 = vmul.f32 %v734_v49, %v728_v30  ;;  %v742_v7 = vmul.f32 %v738_v31, %v729_v63 }
 0x1b2   : > { %v744_v26 = vadd.f32 %v742_v7, %v682_v1  ;;  %v1521_v1 = vld [vmem:[%s3734_s22] sm:$0xff] }
 0x1b3   : > { %v788_v14 = vpop.permute.xlu1 %787 }
 0x1b4   : > { %v790_v47 = vsel %vm789_vm12, %v3035_v39, %v788_v14  ;;  %v791_v18 = vsel %vm789_vm12, %v788_v14, %v3035_v39  ;;  %v743_v14 = vadd.f32 %v741_v4, %v681_v56 }
 0x1b5   : > { %v898_v9 = vpop.permute.xlu0 %897  ;;  %v803_v13 = vmul.f32 %v796_v32, %v790_v47  ;;  %v804_v24 = vmul.f32 %v800_v53, %v791_v18 }
 0x1b7   : > { %v805_v12 = vadd.f32 %v803_v13, %v743_v14  ;;  %v806_v61 = vadd.f32 %v804_v24, %v744_v26 }
 0x1be   : > { %v900_v23 = vpop.permute.xlu1 %899 }
 0x1bf   : > { %v901_v36 = vsel %vm424_vm7, %v898_v9, %v900_v23  ;;  %v902_v28 = vsel %vm424_vm7, %v900_v23, %v898_v9 }
 0x1c0   : > { %v903_v21 = vmul.f32 %v902_v28, %v3028_v29  ;;  %v904_v17 = vmul.f32 %v901_v36, %v3031_v48 }
 0x1c2   : > { %v905_v23 = vadd.f32 %v903_v21, %v805_v12  ;;  %v906_v34 = vadd.f32 %v904_v17, %v806_v61 }
 0x1c3   : > { %v948_v27 = vpop.permute.xlu0 %947 }
 0x1c6   : > { %v950_v38 = vpop.permute.xlu1 %949 }
 0x1c7   : > { %v951_v51 = vsel %vm486_vm8, %v948_v27, %v950_v38  ;;  %v952_v39 = vsel %vm486_vm8, %v950_v38, %v948_v27 }
 0x1c8   : > { %v953_v58 = vmul.f32 %v952_v39, %v3042_v46  ;;  %v954_v2 = vmul.f32 %v951_v51, %v3046_v16  ;;  %v1047_v16 = vmul.f32 %v2998_v10, %v3075_v11 }
 0x1ca   : > { %v955_v57 = vadd.f32 %v953_v58, %v905_v23  ;;  %v956_v59 = vadd.f32 %v954_v2, %v906_v34 }
 0x1cb   : > { %v998_v20 = vpop.permute.xlu0 %997 }
 0x1ce   : > { %v1000_v41 = vpop.permute.xlu1 %999 }
 0x1cf   : > { %v1001_v9 = vsel %vm548_vm9, %v998_v20, %v1000_v41  ;;  %v1002_v6 = vsel %vm548_vm9, %v1000_v41, %v998_v20 }
 0x1d0   : > { %v1003_v22 = vmul.f32 %v1002_v6, %v3054_v25  ;;  %v1004_v29 = vmul.f32 %v1001_v9, %v3057_v55  ;;  %v1048_v25 = vmul.f32 %v3000_v5, %v3078_v37 }
 0x1d2   : > { %v1005_v44 = vadd.f32 %v1003_v22, %v955_v57  ;;  %v1006_v42 = vadd.f32 %v1004_v29, %v956_v59 }
 0x1d4   : > { %v1092_v60 = vpop.permute.xlu0 %1091  ;;  %v1049_v45 = vadd.f32 %v1047_v16, %v1005_v44  ;;  %v1050_v0 = vadd.f32 %v1048_v25, %v1006_v42 }
 0x1d8   : > { %v1094_v48 = vpop.permute.xlu1 %1093 }
 0x1d9   : > { %v1095_v3 = vsel %vm665_vm10, %v1092_v60, %v1094_v48  ;;  %v1096_v46 = vsel %vm665_vm10, %v1094_v48, %v1092_v60 }
 0x1da   : > { %v1097_v15 = vmul.f32 %v1095_v3, %v3082_v35  ;;  %v1098_v38 = vmul.f32 %v1096_v46, %v3085_v43 }
 0x1db   : > { %v1142_v54 = vpop.permute.xlu0 %1141 }
 0x1dc   : > { %v1099_v10 = vadd.f32 %v1097_v15, %v1049_v45  ;;  %v1100_v11 = vadd.f32 %v1098_v38, %v1050_v0 }
 0x1de   : > { %v1144_v27 = vpop.permute.xlu1 %1143 }
 0x1df   : > { %v1145_v55 = vsel %vm727_vm11, %v1142_v54, %v1144_v27  ;;  %v1146_v50 = vsel %vm727_vm11, %v1144_v27, %v1142_v54 }
 0x1e0   : > { %v1147_v30 = vmul.f32 %v1145_v55, %v734_v49  ;;  %v1148_v63 = vmul.f32 %v1146_v50, %v738_v31 }
 0x1e2   : > { %v1192_v62 = vpop.permute.xlu0 %1191  ;;  %v1149_v19 = vadd.f32 %v1147_v30, %v1099_v10  ;;  %v1150_v8 = vadd.f32 %v1148_v63, %v1100_v11 }
 0x1e5   : > { %v1194_v33 = vpop.permute.xlu1 %1193 }
 0x1e6   : > { %v1195_v5 = vsel %vm789_vm12, %v1192_v62, %v1194_v33  ;;  %v1196_v37 = vsel %vm789_vm12, %v1194_v33, %v1192_v62 }
 0x1e7   : > { %v1197_v47 = vmul.f32 %v1195_v5, %v796_v32  ;;  %v1198_v18 = vmul.f32 %v1196_v37, %v800_v53 }
 0x1e9   : > { %v1199_v4 = vadd.f32 %v1197_v47, %v1149_v19  ;;  %v1200_v35 = vadd.f32 %v1198_v18, %v1150_v8 }
 0x1eb   : > { %v1431_v43 = vmul.f32 -1.442695, %v1199_v4  ;;  %v1432_v49 = vmul.f32 -1.442695, %v1200_v35 }
 0x1ed   : > { %1513 = vpow2.f32 %v1431_v43 }
 0x1ee   : > { %1515 = vpow2.f32 %v1432_v49 }
 0x1fa   : > { %v1514_v31 = vpop.eup %1513 }
 0x1fb   : > { %v1516_v7 = vpop.eup %1515  ;;  %v1207_v20 = vadd.f32 1.0, %v1514_v31 }
 0x1fc   : > { %v1208_v36 = vadd.f32 1.0, %v1516_v7 }
 0x1fd   : > { %1517 = vrcp.f32 %v1207_v20 }
 0x1fe   : > { %1519 = vrcp.f32 %v1208_v36 }
 0x20a   : > { %v1518_v40 = vpop.eup %1517 }
 0x20b   : > { %v1520_v32 = vpop.eup %1519  ;;  %v1216_v53 = vrot.slane %v1518_v40, %v3728_v52 }
 0x20c   : > { %v1220_v28 = vrot.slane %v1520_v32, %v3728_v52 }
 0x20e   : > { %v1223_v56 = vcombine.low %v1216_v53, %v1220_v28 }
 0x210   : > { %v1225_v13 = vmul.f32 %v1521_v1, %v1223_v56 }
 0x212   : > { %1226 = vst [vmem:[%s179_s17] sm:$0xff] %v1225_v13 }
 0x213   : > { %1597 = shalt.err (!%p1594_p0)
}
 0x214   : > { %s1598_s20 = scalar_lea.hbm %s1240_s30, 128  ;;  %s1602_s26 = scalar_lea.hbm %s3737_s27, 256 }
 0x215   : > { %p1599_p5 = scmp.ne.s32.totalorder %s1240_s30, %s1598_s20  ;;  %p1603_p1 = scmp.lt.s32.totalorder %s1240_s30, %s3737_s27 }
 0x216   : > { %p1604_p4 = scmp.lt.s32.totalorder %s1602_s26, %s1598_s20 }
 0x217   : > { %p1600_p9 = pnand %p1599_p5, %p3738_p3 }
 0x218   : > { %p1605_p6 = por %p1604_p4, %p1603_p1 }
 0x219   : > { %p1601_p12 = pneg %p1600_p9 }
 0x21b   : > { %p1606_p8 = pnand %p1605_p6, %p1601_p12 }
 0x21d   : > { %1609 = shalt.err (!%p1606_p8)
}
 0x21e   : > { %1446 = dma.vmem_to_hbm [thread:$0]  (%p3738_p3), %s1243_s21, 128, %s1240_s30, %s1228_s4  }
 0x21f PF: > { %s3739_s3 = sld [smem:[#allocation14_spill]] }
 0x220   : > { %s3740_s28 = sld [smem:[#allocation19_spill]] }
 0x221   : > { %s3741_s23 = sld [smem:[#allocation17_spill]] }
 0x225   : > { %s1254_s7 = sand.u32 1, %s3739_s3  }
 0x226   : > { %p3742_p11 = scmp.ne.s32.totalorder %s3740_s28, 0  ;;  %s1255_s18 = scalar_lea.sflag [#allocation6], %s1254_s7 }
 0x227   : > { %p3743_p7 = scmp.ge.s32.totalorder %s3741_s23, 2 }
 0x229   : > { %p1457_p10 = pnand %p3743_p7, %p3742_p11 }
 0x22b   : > { %p1458_p2 = pneg %p1457_p10 }
 0x22d   : > { %1637 = dma.done.wait (%p1458_p2), %s1255_s18, 128  }
 0x22e   : > { %1639 = vsyncadd (%p1458_p2), %s1255_s18, 4294967168  ;;  %s3744_s18 = sld [smem:[#allocation20_spill]] }
 0x22f   : > { %s3745_s15 = sld [smem:[#allocation15_spill]] }
 0x230   : > { %s3746_s16 = sld [smem:[#allocation16_spill]] }
 0x231   : > { %s3747_s17 = sld [smem:[#allocation21_spill]] }
 0x234   : > { %p21_p13 = scmp.ge.s32.totalorder %s3744_s18, 4  }
 0x236   :  { %23 = sbr.rel (!%p21_p13) target bundleno = 14 (0xe), region = 90 }
 0x23b   :  { %1260 = vsyncpa [#allocation5], 1 }
 0x23c   :  { %1262 = vsyncpa [#allocation5 + $0x1], 1 }
 0x23d   :  { %1263 = vsyncpa [#allocation8], 1 }
 0x23e   :  { %1264 = vsyncpa [#allocation6], 1 }
 0x23f   :  { %1266 = vsyncpa [#allocation6 + $0x1], 1 }

</bundles_post_ra>
